<compile_context>
chip_gen: v6e
topology: v6e:2x2x1
jax: 0.10.0
libtpu: 0.0.40
codegen_flags: <defaults>
</compile_context>

<pallas_src>
import functools

import jax
import jax.numpy as jnp
import numpy as np
from jax import lax
from jax.experimental import pallas as pl
from jax.experimental.pallas import tpu as pltpu


# ---------------------------------------------------------------------------
# Pallas kernel: grid step 0 = encoder + ctx hoisting, steps 1.. = decoder.
# ---------------------------------------------------------------------------
def seq2seq_kernel(B, H, V, G, src_len,
                   # scalar prefetch
                   tf_ref,              # SMEM (trg_len,) int32 teacher-forcing mask
                   # inputs
                   src_gi_ref,          # (src_len, B, G) bf16  enc x@W_ih + b_ih (hoisted)
                   trg_fused_ref,       # (1, B, G+V)     bf16  this step's trg_emb @ [W_ih_e|fc_we]
                   dec_tbl_ref,         # (V, E)          bf16  decoder embedding table
                   w_fused_ref,         # (E, G+V)        bf16  fused decoder input weight
                   enc_whh_ref,         # (H, G)          bf16
                   enc_bhh_ref,         # (1, G)          f32
                   dec_wih_c_ref,       # (H, G)          bf16  (context rows of decoder W_ih)
                   dec_whh_ref,         # (H, G)          bf16
                   dec_bih_ref,         # (1, G)          f32
                   dec_bhh_ref,         # (1, G)          f32
                   fc_wh_ref,           # (H, V)          bf16
                   fc_wc_ref,           # (H, V)          bf16
                   fc_b_ref,            # (1, V)          f32
                   # output block
                   out_ref,             # (1, B, V)       f32
                   # scratch (persists across grid steps)
                   h_scr,               # (B, H)    f32   hidden state carry
                   gic_scr,             # (B, G)    f32   ctx @ W_ih_ctx + b_ih
                   pc_scr,              # (B, V)    f32   ctx @ fc_wc + fc_b
                   fused_scr):          # (B, G+V)  f32   next-step fused input carry
    f32 = jnp.float32
    bf16 = jnp.bfloat16
    t = pl.program_id(0)

    def gates(gi, gh, h):
        # PyTorch GRU gate order r, z, n packed contiguously in the first 3H lanes.
        r = jax.nn.sigmoid(gi[:, 0:H] + gh[:, 0:H])
        z = jax.nn.sigmoid(gi[:, H:2 * H] + gh[:, H:2 * H])
        n = jnp.tanh(gi[:, 2 * H:3 * H] + r * gh[:, 2 * H:3 * H])
        return (1.0 - z) * n + z * h

    # -------- grid step 0: encoder recurrence + decoder-constant hoisting ----
    @pl.when(t == 0)
    def _():
        enc_bhh = jnp.broadcast_to(enc_bhh_ref[...], (B, G))   # hoisted broadcast

        def enc_step(s, h):
            gi = src_gi_ref[s].astype(f32)                      # precomputed x@W_ih + b_ih
            gh = jnp.dot(h.astype(bf16), enc_whh_ref[...],
                         preferred_element_type=f32) + enc_bhh
            return gates(gi, gh, h)

        # TODO(synk): hold enc_whh / dec_whh / fc_wh in MXU weight registers via
        # pltpu.matmul_push_rhs (loop-invariant RHS) if the per-step RHS push
        # ever dominates; unroll already exposes the overlap to the scheduler.
        ctx = lax.fori_loop(0, src_len, enc_step,
                            jnp.zeros((B, H), f32), unroll=True)
        ctx_b = ctx.astype(bf16)

        h_scr[...] = ctx                                         # hidden init = context
        gic_scr[...] = (jnp.dot(ctx_b, dec_wih_c_ref[...],
                                preferred_element_type=f32) + dec_bih_ref[...])
        pc_scr[...] = (jnp.dot(ctx_b, fc_wc_ref[...],
                               preferred_element_type=f32) + fc_b_ref[...])
        # initial decoder input = trg[0] (this grid step's trg_fused block)
        fused_scr[...] = trg_fused_ref[0].astype(f32)
        # outputs[0] stays zero, as in the PyTorch module
        out_ref[0] = jnp.zeros((B, V), f32)

    # -------- grid steps 1..trg_len-1: one decoder step each ------------------
    @pl.when(t > 0)
    def _():
        h = h_scr[...]
        fused = fused_scr[...]                 # inp @ [W_ih_embed | fc_we], f32
        gi = fused[:, 0:G] + gic_scr[...]
        gh = (jnp.dot(h.astype(bf16), dec_whh_ref[...],
                      preferred_element_type=f32) + dec_bhh_ref[...])
        h_new = gates(gi, gh, h)

        pred = (fused[:, G:]
                + jnp.dot(h_new.astype(bf16), fc_wh_ref[...],
                          preferred_element_type=f32)
                + pc_scr[...])                 # (B, V)
        out_ref[0] = pred
        h_scr[...] = h_new

        def teacher_forced():
            # common path: fully precomputed per-step block, just copy to scratch
            return trg_fused_ref[0].astype(f32)

        def greedy():
            # only evaluated when teacher forcing is off for this step; the
            # full-table reads stay inside this branch.
            # TODO(synk): at realistic V replace the one-hot matmul embed with a
            # per-row DMA gather from the embedding table kept in HBM.
            top1 = jnp.argmax(pred, axis=1).reshape(B, 1)
            onehot = (lax.broadcasted_iota(jnp.int32, (B, V), 1) == top1).astype(bf16)
            emb = jnp.dot(onehot, dec_tbl_ref[...], preferred_element_type=f32)
            return jnp.dot(emb.astype(bf16), w_fused_ref[...],
                           preferred_element_type=f32)

        fused_scr[...] = lax.cond(tf_ref[t] > 0, teacher_forced, greedy)


# ---------------------------------------------------------------------------
# Wrapper: gate-packed weight prep + hoisted projections, then one pallas_call.
# ---------------------------------------------------------------------------
def _gate_pack_cols(w_t, H, G):
    """(K, 3H) -> (K, G): gates r,z,n stay contiguous in the first 3H lanes."""
    K = w_t.shape[0]
    return jnp.zeros((K, G), w_t.dtype).at[:, :3 * H].set(w_t)


def _gate_pack_bias(b, H, G):
    return jnp.zeros((1, G), b.dtype).at[0, :3 * H].set(b)


def _pad_batch(x, B):
    pad = B - x.shape[1]
    return jnp.pad(x, ((0, 0), (0, pad), (0, 0))) if pad else x


def rnn_seq2seq_pallas(params, src, trg, tf_mask):
    src_len, B_in = src.shape
    trg_len, _ = trg.shape
    E = params["enc_emb"].shape[1]
    H = params["enc_whh"].shape[1]
    V = params["dec_emb"].shape[0]
    f32, bf16 = jnp.float32, jnp.bfloat16

    assert 3 * H <= 128, "this kernel packs all 3 GRU gates into one 128-lane block"
    G = 128                       # one lane-aligned block holds all 3 gates
    GV = G + V
    # keep V lane-aligned so per-step (B, V) stores are unmasked lane-dense vst
    assert V % 128 == 0, "pad the vocab dim to a multiple of 128"

    # pad batch so the bf16 MXU LHS fills full (16,128) sublane packs
    B = max(16, ((B_in + 15) // 16) * 16)

    # embedding gathers (glue)
    src_emb = params["enc_emb"][src]                      # (src_len, B_in, E)
    trg_emb = params["dec_emb"][trg]                      # (trg_len, B_in, E)

    # encoder weights (gate-packed; NO K row padding)
    enc_wih_p = _gate_pack_cols(params["enc_wih"].T, H, G)          # (E, G)
    enc_bih_p = _gate_pack_bias(params["enc_bih"], H, G)            # (1, G)
    enc_whh_p = _gate_pack_cols(params["enc_whh"].T, H, G)          # (H, G)
    enc_bhh_p = _gate_pack_bias(params["enc_bhh"], H, G)

    # hoisted encoder input projection: one big matmul OFF the recurrence
    src_gi = jnp.einsum("tbe,eg->tbg", src_emb, enc_wih_p) + enc_bih_p

    # decoder weights
    dec_wih_t = params["dec_wih"].T                       # (E+H, 3H)
    dec_wih_e_p = _gate_pack_cols(dec_wih_t[:E], H, G)              # (E, G)
    dec_wih_c_p = _gate_pack_cols(dec_wih_t[E:], H, G)              # (H, G)
    dec_whh_p = _gate_pack_cols(params["dec_whh"].T, H, G)          # (H, G)
    dec_bih_p = _gate_pack_bias(params["dec_bih"], H, G)
    dec_bhh_p = _gate_pack_bias(params["dec_bhh"], H, G)

    fc_w_t = params["fc_w"].T                             # (E+2H, V)
    fc_we = fc_w_t[:E]                                    # (E, V)
    fc_wh = fc_w_t[E:E + H]                               # (H, V)
    fc_wc = fc_w_t[E + H:]                                # (H, V)
    fc_b = params["fc_b"][None, :]                        # (1, V)

    # fused same-LHS decoder input weight: inp @ [W_ih_embed | fc_we] in ONE matmul;
    # teacher-forcing path precomputed for all steps (off the serial chain).
    w_fused = jnp.concatenate([dec_wih_e_p, fc_we], axis=1)         # (E, G+V)
    trg_fused = jnp.einsum("tbe,ef->tbf", trg_emb, w_fused)         # (trg_len, B_in, GV)

    # pad batch; store the two large precomputed activations bf16 (halves DMA)
    src_gi = _pad_batch(src_gi, B).astype(bf16)           # (src_len, B, G)
    trg_fused = _pad_batch(trg_fused, B).astype(bf16)     # (trg_len, B, GV)

    kernel = functools.partial(seq2seq_kernel, B, H, V, G, src_len)

    def resident(shape):
        zeros = (0,) * len(shape)
        return pl.BlockSpec(shape, lambda t, tf: zeros)   # loaded once, VMEM resident

    inputs = (tf_mask.astype(jnp.int32),                  # scalar-prefetch (SMEM)
              src_gi,
              trg_fused,
              params["dec_emb"].astype(bf16),
              w_fused.astype(bf16),
              enc_whh_p.astype(bf16), enc_bhh_p.astype(f32),
              dec_wih_c_p.astype(bf16), dec_whh_p.astype(bf16),
              dec_bih_p.astype(f32), dec_bhh_p.astype(f32),
              fc_wh.astype(bf16), fc_wc.astype(bf16), fc_b.astype(f32))

    # TODO(synk): at realistic vocab sizes (V >= 16k) block fc_wh/fc_wc/w_fused and
    # the per-step (B,V) output over V (second grid axis) instead of VMEM-resident,
    # and set vmem_limit_bytes explicitly (v7x: 64 MiB physical, 32 MiB scoped).
    # TODO(synk): on v7x, add a parallel batch-tile grid axis to use both TCs.
    grid_spec = pltpu.PrefetchScalarGridSpec(
        num_scalar_prefetch=1,
        grid=(trg_len,),
        in_specs=[
            resident(src_gi.shape),
            pl.BlockSpec((1, B, GV), lambda t, tf: (t, 0, 0)),   # pipelined per step
            resident(inputs[3].shape),
            resident(w_fused.shape),
            resident(enc_whh_p.shape), resident(enc_bhh_p.shape),
            resident(dec_wih_c_p.shape), resident(dec_whh_p.shape),
            resident(dec_bih_p.shape), resident(dec_bhh_p.shape),
            resident(fc_wh.shape), resident(fc_wc.shape), resident(fc_b.shape),
        ],
        out_specs=pl.BlockSpec((1, B, V), lambda t, tf: (t, 0, 0)),
        scratch_shapes=[
            pltpu.VMEM((B, H), f32),
            pltpu.VMEM((B, G), f32),
            pltpu.VMEM((B, V), f32),
            pltpu.VMEM((B, GV), f32),
        ],
    )

    # advisory cost hint so XLA schedules the embedding/precompute glue around us
    flops = (src_len * 2 * B * H * G
             + 2 * B * H * G + 2 * B * H * V
             + (trg_len - 1) * (2 * B * H * G + 2 * B * H * V
                                + 2 * B * V * E + 2 * B * E * GV))
    bytes_accessed = (sum(int(x.size) * x.dtype.itemsize for x in inputs)
                      + trg_len * B * V * 4)
    cost = pl.CostEstimate(flops=int(flops),
                           transcendentals=int(3 * B * H * (src_len + trg_len)),
                           bytes_accessed=int(bytes_accessed))

    out = pl.pallas_call(
        kernel,
        grid_spec=grid_spec,
        out_shape=jax.ShapeDtypeStruct((trg_len, B, V), f32),
        compiler_params=pltpu.CompilerParams(
            dimension_semantics=("arbitrary",)),   # serial recurrence over time
        cost_estimate=cost,
    )(*inputs)
    return out[:, :B_in, :]


# ---------------------------------------------------------------------------
# Pure-JAX reference (mirrors the PyTorch forward pass).
# ---------------------------------------------------------------------------
def _gru_cell_ref(x, h, wih, whh, bih, bhh, H):
    gi = x @ wih.T + bih
    gh = h @ whh.T + bhh
    r = jax.nn.sigmoid(gi[:, :H] + gh[:, :H])
    z = jax.nn.sigmoid(gi[:, H:2 * H] + gh[:, H:2 * H])
    n = jnp.tanh(gi[:, 2 * H:] + r * gh[:, 2 * H:])
    return (1.0 - z) * n + z * h


def reference_forward(params, src, trg, tf_mask):
    H = params["enc_whh"].shape[1]
    V = params["dec_emb"].shape[0]
    src_len, B = src.shape
    trg_len = trg.shape[0]

    h = jnp.zeros((B, H), jnp.float32)
    for t in range(src_len):
        x = params["enc_emb"][src[t]]
        h = _gru_cell_ref(x, h, params["enc_wih"], params["enc_whh"],
                          params["enc_bih"], params["enc_bhh"], H)
    ctx = h

    outputs = [jnp.zeros((B, V), jnp.float32)]
    hid = ctx
    inp_tok = trg[0]
    for t in range(1, trg_len):
        emb = params["dec_emb"][inp_tok]
        x = jnp.concatenate([emb, ctx], axis=1)
        hid = _gru_cell_ref(x, hid, params["dec_wih"], params["dec_whh"],
                            params["dec_bih"], params["dec_bhh"], H)
        feat = jnp.concatenate([emb, hid, ctx], axis=1)
        pred = feat @ params["fc_w"].T + params["fc_b"]
        outputs.append(pred)
        top1 = jnp.argmax(pred, axis=1)
        inp_tok = jnp.where(tf_mask[t] > 0, trg[t], top1)
    return jnp.stack(outputs, axis=0)


# ---------------------------------------------------------------------------
# Deterministic parameter init (module's init_weights uses N(0, 0.01) / 0;
# small normals everywhere so the bias path is exercised too).
# ---------------------------------------------------------------------------
def init_params(key, src_vocab, trg_vocab, E, H):
    ks = jax.random.split(key, 14)
    w = lambda k, shape, s=0.1: s * jax.random.normal(k, shape, jnp.float32)
    return {
        "enc_emb": w(ks[0], (src_vocab, E)),
        "enc_wih": w(ks[1], (3 * H, E)),
        "enc_whh": w(ks[2], (3 * H, H)),
        "enc_bih": w(ks[3], (3 * H,), 0.01),
        "enc_bhh": w(ks[4], (3 * H,), 0.01),
        "dec_emb": w(ks[5], (trg_vocab, E)),
        "dec_wih": w(ks[6], (3 * H, E + H)),
        "dec_whh": w(ks[7], (3 * H, H)),
        "dec_bih": w(ks[8], (3 * H,), 0.01),
        "dec_bhh": w(ks[9], (3 * H,), 0.01),
        "fc_w": w(ks[10], (trg_vocab, E + 2 * H)),
        "fc_b": w(ks[11], (trg_vocab,), 0.01),
    }


if __name__ == "__main__":
    SRC_V, TRG_V, E, H = 96, 128, 32, 32
    B, SRC_LEN, TRG_LEN = 8, 10, 8

    key = jax.random.PRNGKey(0)
    kp, ks, kt = jax.random.split(key, 3)
    params = init_params(kp, SRC_V, TRG_V, E, H)
    src = jax.random.randint(ks, (SRC_LEN, B), 0, SRC_V, dtype=jnp.int32)
    trg = jax.random.randint(kt, (TRG_LEN, B), 0, TRG_V, dtype=jnp.int32)

    # TODO(synk): random.random() teacher forcing is nondeterministic python RNG;
    # it is exposed as a precomputed per-step mask (teacher_forcing_ratio=1.0 ->
    # all True).  Dropout(p=0.0) is an identity and is omitted.
    tf_mask = jnp.ones((TRG_LEN,), jnp.int32)

    out = rnn_seq2seq_pallas(params, src, trg, tf_mask)
    out = jax.block_until_ready(out)

    ref = reference_forward(params, src, trg, tf_mask)
    assert out.shape == (TRG_LEN, B, TRG_V)
    # bf16 MXU operands + bf16-stored precomputed activations vs f32 reference
    np.testing.assert_allclose(np.asarray(out), np.asarray(ref),
                               rtol=4e-2, atol=6e-3)

    print("KERNEL_OK")
</pallas_src>

<mosaic_0001>
module attributes {stable_mosaic.version = 11 : i64} {
  func.func @seq2seq_kernel(%arg0: i32, %arg1: memref<8xi32, #tpu.memory_space<smem>>, %arg2: memref<10x16x128xbf16, #tpu.memory_space<vmem>>, %arg3: memref<1x16x256xbf16, #tpu.memory_space<vmem>>, %arg4: memref<128x32xbf16, #tpu.memory_space<vmem>>, %arg5: memref<32x256xbf16, #tpu.memory_space<vmem>>, %arg6: memref<32x128xbf16, #tpu.memory_space<vmem>>, %arg7: memref<1x128xf32, #tpu.memory_space<vmem>>, %arg8: memref<32x128xbf16, #tpu.memory_space<vmem>>, %arg9: memref<32x128xbf16, #tpu.memory_space<vmem>>, %arg10: memref<1x128xf32, #tpu.memory_space<vmem>>, %arg11: memref<1x128xf32, #tpu.memory_space<vmem>>, %arg12: memref<32x128xbf16, #tpu.memory_space<vmem>>, %arg13: memref<32x128xbf16, #tpu.memory_space<vmem>>, %arg14: memref<1x128xf32, #tpu.memory_space<vmem>>, %arg15: memref<1x16x128xf32, #tpu.memory_space<vmem>>, %arg16: memref<16x32xf32, #tpu.memory_space<vmem>>, %arg17: memref<16x128xf32, #tpu.memory_space<vmem>>, %arg18: memref<16x128xf32, #tpu.memory_space<vmem>>, %arg19: memref<16x256xf32, #tpu.memory_space<vmem>>) attributes {dimension_semantics = [#tpu.dimension_semantics<arbitrary>], iteration_bounds = array<i64: 8>, scalar_prefetch = 1 : i64, scratch_operands = 4 : i64, tpu.core_type = #tpu.core_type<tc>, window_params = [{pipeline_mode = #tpu.pipeline_mode<synchronous>, transform_indices = @transform_0, window_bounds = array<i64: 10, 16, 128>}, {transform_indices = @transform_1, window_bounds = array<i64: 1, 16, 256>}, {pipeline_mode = #tpu.pipeline_mode<synchronous>, transform_indices = @transform_2, window_bounds = array<i64: 128, 32>}, {pipeline_mode = #tpu.pipeline_mode<synchronous>, transform_indices = @transform_3, window_bounds = array<i64: 32, 256>}, {pipeline_mode = #tpu.pipeline_mode<synchronous>, transform_indices = @transform_4, window_bounds = array<i64: 32, 128>}, {pipeline_mode = #tpu.pipeline_mode<synchronous>, transform_indices = @transform_5, window_bounds = array<i64: 1, 128>}, {pipeline_mode = #tpu.pipeline_mode<synchronous>, transform_indices = @transform_6, window_bounds = array<i64: 32, 128>}, {pipeline_mode = #tpu.pipeline_mode<synchronous>, transform_indices = @transform_7, window_bounds = array<i64: 32, 128>}, {pipeline_mode = #tpu.pipeline_mode<synchronous>, transform_indices = @transform_8, window_bounds = array<i64: 1, 128>}, {pipeline_mode = #tpu.pipeline_mode<synchronous>, transform_indices = @transform_9, window_bounds = array<i64: 1, 128>}, {pipeline_mode = #tpu.pipeline_mode<synchronous>, transform_indices = @transform_10, window_bounds = array<i64: 32, 128>}, {pipeline_mode = #tpu.pipeline_mode<synchronous>, transform_indices = @transform_11, window_bounds = array<i64: 32, 128>}, {pipeline_mode = #tpu.pipeline_mode<synchronous>, transform_indices = @transform_12, window_bounds = array<i64: 1, 128>}, {transform_indices = @transform_13, window_bounds = array<i64: 1, 16, 128>}]} {
    %c0_i32 = arith.constant 0 : i32
    %0 = arith.cmpi eq, %arg0, %c0_i32 : i32
    %1 = arith.extui %0 : i1 to i32
    %c0_i32_0 = arith.constant 0 : i32
    %2 = arith.cmpi ne, %1, %c0_i32_0 : i32
    scf.if %2 {
      %c0 = arith.constant 0 : index
      %c0_3 = arith.constant 0 : index
      %6 = vector.load %arg7[%c0, %c0_3] : memref<1x128xf32, #tpu.memory_space<vmem>>, vector<1x128xf32>
      %7 = vector.shape_cast %6 : vector<1x128xf32> to vector<1x128xf32>
      %8 = vector.broadcast %7 : vector<1x128xf32> to vector<16x128xf32>
      %cst = arith.constant 0.000000e+00 : f32
      %9 = vector.broadcast %cst : f32 to vector<16x32xf32>
      %c0_i32_4 = arith.constant 0 : i32
      %10 = arith.index_cast %c0_i32_4 : i32 to index
      %c0_5 = arith.constant 0 : index
      %c0_6 = arith.constant 0 : index
      %11 = vector.load %arg2[%10, %c0_5, %c0_6] : memref<10x16x128xbf16, #tpu.memory_space<vmem>>, vector<1x16x128xbf16>
      %12 = vector.shape_cast %11 : vector<1x16x128xbf16> to vector<16x128xbf16>
      %13 = arith.extf %12 : vector<16x128xbf16> to vector<16x128xf32>
      %14 = arith.truncf %9 : vector<16x32xf32> to vector<16x32xbf16>
      %c0_7 = arith.constant 0 : index
      %c0_8 = arith.constant 0 : index
      %15 = vector.load %arg6[%c0_7, %c0_8] : memref<32x128xbf16, #tpu.memory_space<vmem>>, vector<32x128xbf16>
      %cst_9 = arith.constant dense<0.000000e+00> : vector<16x128xf32>
      %16 = tpu.matmul %14, %15, %cst_9 {dimension_numbers = #tpu.dot_dimension_numbers<[1], [0], [0], [1], [0, 0, 1, 1], [], []>} : vector<16x32xbf16>, vector<32x128xbf16>, vector<16x128xf32> -> vector<16x128xf32>
      %17 = arith.addf %16, %8 : vector<16x128xf32>
      %18 = vector.extract_strided_slice %13 {offsets = [0, 0], sizes = [16, 32], strides = [1, 1]} : vector<16x128xf32> to vector<16x32xf32>
      %19 = vector.extract_strided_slice %17 {offsets = [0, 0], sizes = [16, 32], strides = [1, 1]} : vector<16x128xf32> to vector<16x32xf32>
      %20 = arith.addf %18, %19 : vector<16x32xf32>
      %21 = arith.negf %20 : vector<16x32xf32>
      %22 = math.exp %21 : vector<16x32xf32>
      %cst_10 = arith.constant 1.000000e+00 : f32
      %23 = vector.broadcast %cst_10 : f32 to vector<16x32xf32>
      %24 = arith.addf %23, %22 : vector<16x32xf32>
      %25 = arith.divf %23, %24 : vector<16x32xf32>
      %26 = vector.extract_strided_slice %13 {offsets = [0, 32], sizes = [16, 32], strides = [1, 1]} : vector<16x128xf32> to vector<16x32xf32>
      %27 = vector.extract_strided_slice %17 {offsets = [0, 32], sizes = [16, 32], strides = [1, 1]} : vector<16x128xf32> to vector<16x32xf32>
      %28 = arith.addf %26, %27 : vector<16x32xf32>
      %29 = arith.negf %28 : vector<16x32xf32>
      %30 = math.exp %29 : vector<16x32xf32>
      %cst_11 = arith.constant 1.000000e+00 : f32
      %31 = vector.broadcast %cst_11 : f32 to vector<16x32xf32>
      %32 = arith.addf %31, %30 : vector<16x32xf32>
      %33 = arith.divf %31, %32 : vector<16x32xf32>
      %34 = vector.extract_strided_slice %13 {offsets = [0, 64], sizes = [16, 32], strides = [1, 1]} : vector<16x128xf32> to vector<16x32xf32>
      %35 = vector.extract_strided_slice %17 {offsets = [0, 64], sizes = [16, 32], strides = [1, 1]} : vector<16x128xf32> to vector<16x32xf32>
      %36 = arith.mulf %25, %35 : vector<16x32xf32>
      %37 = arith.addf %34, %36 : vector<16x32xf32>
      %38 = math.tanh %37 : vector<16x32xf32>
      %cst_12 = arith.constant 1.000000e+00 : f32
      %39 = vector.broadcast %cst_12 : f32 to vector<16x32xf32>
      %40 = arith.subf %39, %33 : vector<16x32xf32>
      %41 = arith.mulf %40, %38 : vector<16x32xf32>
      %42 = arith.mulf %33, %9 : vector<16x32xf32>
      %43 = arith.addf %41, %42 : vector<16x32xf32>
      %c1_i32 = arith.constant 1 : i32
      %44 = arith.index_cast %c1_i32 : i32 to index
      %c0_13 = arith.constant 0 : index
      %c0_14 = arith.constant 0 : index
      %45 = vector.load %arg2[%44, %c0_13, %c0_14] : memref<10x16x128xbf16, #tpu.memory_space<vmem>>, vector<1x16x128xbf16>
      %46 = vector.shape_cast %45 : vector<1x16x128xbf16> to vector<16x128xbf16>
      %47 = arith.extf %46 : vector<16x128xbf16> to vector<16x128xf32>
      %48 = arith.truncf %43 : vector<16x32xf32> to vector<16x32xbf16>
      %c0_15 = arith.constant 0 : index
      %c0_16 = arith.constant 0 : index
      %49 = vector.load %arg6[%c0_15, %c0_16] : memref<32x128xbf16, #tpu.memory_space<vmem>>, vector<32x128xbf16>
      %cst_17 = arith.constant dense<0.000000e+00> : vector<16x128xf32>
      %50 = tpu.matmul %48, %49, %cst_17 {dimension_numbers = #tpu.dot_dimension_numbers<[1], [0], [0], [1], [0, 0, 1, 1], [], []>} : vector<16x32xbf16>, vector<32x128xbf16>, vector<16x128xf32> -> vector<16x128xf32>
      %51 = arith.addf %50, %8 : vector<16x128xf32>
      %52 = vector.extract_strided_slice %47 {offsets = [0, 0], sizes = [16, 32], strides = [1, 1]} : vector<16x128xf32> to vector<16x32xf32>
      %53 = vector.extract_strided_slice %51 {offsets = [0, 0], sizes = [16, 32], strides = [1, 1]} : vector<16x128xf32> to vector<16x32xf32>
      %54 = arith.addf %52, %53 : vector<16x32xf32>
      %55 = arith.negf %54 : vector<16x32xf32>
      %56 = math.exp %55 : vector<16x32xf32>
      %cst_18 = arith.constant 1.000000e+00 : f32
      %57 = vector.broadcast %cst_18 : f32 to vector<16x32xf32>
      %58 = arith.addf %57, %56 : vector<16x32xf32>
      %59 = arith.divf %57, %58 : vector<16x32xf32>
      %60 = vector.extract_strided_slice %47 {offsets = [0, 32], sizes = [16, 32], strides = [1, 1]} : vector<16x128xf32> to vector<16x32xf32>
      %61 = vector.extract_strided_slice %51 {offsets = [0, 32], sizes = [16, 32], strides = [1, 1]} : vector<16x128xf32> to vector<16x32xf32>
      %62 = arith.addf %60, %61 : vector<16x32xf32>
      %63 = arith.negf %62 : vector<16x32xf32>
      %64 = math.exp %63 : vector<16x32xf32>
      %cst_19 = arith.constant 1.000000e+00 : f32
      %65 = vector.broadcast %cst_19 : f32 to vector<16x32xf32>
      %66 = arith.addf %65, %64 : vector<16x32xf32>
      %67 = arith.divf %65, %66 : vector<16x32xf32>
      %68 = vector.extract_strided_slice %47 {offsets = [0, 64], sizes = [16, 32], strides = [1, 1]} : vector<16x128xf32> to vector<16x32xf32>
      %69 = vector.extract_strided_slice %51 {offsets = [0, 64], sizes = [16, 32], strides = [1, 1]} : vector<16x128xf32> to vector<16x32xf32>
      %70 = arith.mulf %59, %69 : vector<16x32xf32>
      %71 = arith.addf %68, %70 : vector<16x32xf32>
      %72 = math.tanh %71 : vector<16x32xf32>
      %cst_20 = arith.constant 1.000000e+00 : f32
      %73 = vector.broadcast %cst_20 : f32 to vector<16x32xf32>
      %74 = arith.subf %73, %67 : vector<16x32xf32>
      %75 = arith.mulf %74, %72 : vector<16x32xf32>
      %76 = arith.mulf %67, %43 : vector<16x32xf32>
      %77 = arith.addf %75, %76 : vector<16x32xf32>
      %c2_i32 = arith.constant 2 : i32
      %78 = arith.index_cast %c2_i32 : i32 to index
      %c0_21 = arith.constant 0 : index
      %c0_22 = arith.constant 0 : index
      %79 = vector.load %arg2[%78, %c0_21, %c0_22] : memref<10x16x128xbf16, #tpu.memory_space<vmem>>, vector<1x16x128xbf16>
      %80 = vector.shape_cast %79 : vector<1x16x128xbf16> to vector<16x128xbf16>
      %81 = arith.extf %80 : vector<16x128xbf16> to vector<16x128xf32>
      %82 = arith.truncf %77 : vector<16x32xf32> to vector<16x32xbf16>
      %c0_23 = arith.constant 0 : index
      %c0_24 = arith.constant 0 : index
      %83 = vector.load %arg6[%c0_23, %c0_24] : memref<32x128xbf16, #tpu.memory_space<vmem>>, vector<32x128xbf16>
      %cst_25 = arith.constant dense<0.000000e+00> : vector<16x128xf32>
      %84 = tpu.matmul %82, %83, %cst_25 {dimension_numbers = #tpu.dot_dimension_numbers<[1], [0], [0], [1], [0, 0, 1, 1], [], []>} : vector<16x32xbf16>, vector<32x128xbf16>, vector<16x128xf32> -> vector<16x128xf32>
      %85 = arith.addf %84, %8 : vector<16x128xf32>
      %86 = vector.extract_strided_slice %81 {offsets = [0, 0], sizes = [16, 32], strides = [1, 1]} : vector<16x128xf32> to vector<16x32xf32>
      %87 = vector.extract_strided_slice %85 {offsets = [0, 0], sizes = [16, 32], strides = [1, 1]} : vector<16x128xf32> to vector<16x32xf32>
      %88 = arith.addf %86, %87 : vector<16x32xf32>
      %89 = arith.negf %88 : vector<16x32xf32>
      %90 = math.exp %89 : vector<16x32xf32>
      %cst_26 = arith.constant 1.000000e+00 : f32
      %91 = vector.broadcast %cst_26 : f32 to vector<16x32xf32>
      %92 = arith.addf %91, %90 : vector<16x32xf32>
      %93 = arith.divf %91, %92 : vector<16x32xf32>
      %94 = vector.extract_strided_slice %81 {offsets = [0, 32], sizes = [16, 32], strides = [1, 1]} : vector<16x128xf32> to vector<16x32xf32>
      %95 = vector.extract_strided_slice %85 {offsets = [0, 32], sizes = [16, 32], strides = [1, 1]} : vector<16x128xf32> to vector<16x32xf32>
      %96 = arith.addf %94, %95 : vector<16x32xf32>
      %97 = arith.negf %96 : vector<16x32xf32>
      %98 = math.exp %97 : vector<16x32xf32>
      %cst_27 = arith.constant 1.000000e+00 : f32
      %99 = vector.broadcast %cst_27 : f32 to vector<16x32xf32>
      %100 = arith.addf %99, %98 : vector<16x32xf32>
      %101 = arith.divf %99, %100 : vector<16x32xf32>
      %102 = vector.extract_strided_slice %81 {offsets = [0, 64], sizes = [16, 32], strides = [1, 1]} : vector<16x128xf32> to vector<16x32xf32>
      %103 = vector.extract_strided_slice %85 {offsets = [0, 64], sizes = [16, 32], strides = [1, 1]} : vector<16x128xf32> to vector<16x32xf32>
      %104 = arith.mulf %93, %103 : vector<16x32xf32>
      %105 = arith.addf %102, %104 : vector<16x32xf32>
      %106 = math.tanh %105 : vector<16x32xf32>
      %cst_28 = arith.constant 1.000000e+00 : f32
      %107 = vector.broadcast %cst_28 : f32 to vector<16x32xf32>
      %108 = arith.subf %107, %101 : vector<16x32xf32>
      %109 = arith.mulf %108, %106 : vector<16x32xf32>
      %110 = arith.mulf %101, %77 : vector<16x32xf32>
      %111 = arith.addf %109, %110 : vector<16x32xf32>
      %c3_i32 = arith.constant 3 : i32
      %112 = arith.index_cast %c3_i32 : i32 to index
      %c0_29 = arith.constant 0 : index
      %c0_30 = arith.constant 0 : index
      %113 = vector.load %arg2[%112, %c0_29, %c0_30] : memref<10x16x128xbf16, #tpu.memory_space<vmem>>, vector<1x16x128xbf16>
      %114 = vector.shape_cast %113 : vector<1x16x128xbf16> to vector<16x128xbf16>
      %115 = arith.extf %114 : vector<16x128xbf16> to vector<16x128xf32>
      %116 = arith.truncf %111 : vector<16x32xf32> to vector<16x32xbf16>
      %c0_31 = arith.constant 0 : index
      %c0_32 = arith.constant 0 : index
      %117 = vector.load %arg6[%c0_31, %c0_32] : memref<32x128xbf16, #tpu.memory_space<vmem>>, vector<32x128xbf16>
      %cst_33 = arith.constant dense<0.000000e+00> : vector<16x128xf32>
      %118 = tpu.matmul %116, %117, %cst_33 {dimension_numbers = #tpu.dot_dimension_numbers<[1], [0], [0], [1], [0, 0, 1, 1], [], []>} : vector<16x32xbf16>, vector<32x128xbf16>, vector<16x128xf32> -> vector<16x128xf32>
      %119 = arith.addf %118, %8 : vector<16x128xf32>
      %120 = vector.extract_strided_slice %115 {offsets = [0, 0], sizes = [16, 32], strides = [1, 1]} : vector<16x128xf32> to vector<16x32xf32>
      %121 = vector.extract_strided_slice %119 {offsets = [0, 0], sizes = [16, 32], strides = [1, 1]} : vector<16x128xf32> to vector<16x32xf32>
      %122 = arith.addf %120, %121 : vector<16x32xf32>
      %123 = arith.negf %122 : vector<16x32xf32>
      %124 = math.exp %123 : vector<16x32xf32>
      %cst_34 = arith.constant 1.000000e+00 : f32
      %125 = vector.broadcast %cst_34 : f32 to vector<16x32xf32>
      %126 = arith.addf %125, %124 : vector<16x32xf32>
      %127 = arith.divf %125, %126 : vector<16x32xf32>
      %128 = vector.extract_strided_slice %115 {offsets = [0, 32], sizes = [16, 32], strides = [1, 1]} : vector<16x128xf32> to vector<16x32xf32>
      %129 = vector.extract_strided_slice %119 {offsets = [0, 32], sizes = [16, 32], strides = [1, 1]} : vector<16x128xf32> to vector<16x32xf32>
      %130 = arith.addf %128, %129 : vector<16x32xf32>
      %131 = arith.negf %130 : vector<16x32xf32>
      %132 = math.exp %131 : vector<16x32xf32>
      %cst_35 = arith.constant 1.000000e+00 : f32
      %133 = vector.broadcast %cst_35 : f32 to vector<16x32xf32>
      %134 = arith.addf %133, %132 : vector<16x32xf32>
      %135 = arith.divf %133, %134 : vector<16x32xf32>
      %136 = vector.extract_strided_slice %115 {offsets = [0, 64], sizes = [16, 32], strides = [1, 1]} : vector<16x128xf32> to vector<16x32xf32>
      %137 = vector.extract_strided_slice %119 {offsets = [0, 64], sizes = [16, 32], strides = [1, 1]} : vector<16x128xf32> to vector<16x32xf32>
      %138 = arith.mulf %127, %137 : vector<16x32xf32>
      %139 = arith.addf %136, %138 : vector<16x32xf32>
      %140 = math.tanh %139 : vector<16x32xf32>
      %cst_36 = arith.constant 1.000000e+00 : f32
      %141 = vector.broadcast %cst_36 : f32 to vector<16x32xf32>
      %142 = arith.subf %141, %135 : vector<16x32xf32>
      %143 = arith.mulf %142, %140 : vector<16x32xf32>
      %144 = arith.mulf %135, %111 : vector<16x32xf32>
      %145 = arith.addf %143, %144 : vector<16x32xf32>
      %c4_i32 = arith.constant 4 : i32
      %146 = arith.index_cast %c4_i32 : i32 to index
      %c0_37 = arith.constant 0 : index
      %c0_38 = arith.constant 0 : index
      %147 = vector.load %arg2[%146, %c0_37, %c0_38] : memref<10x16x128xbf16, #tpu.memory_space<vmem>>, vector<1x16x128xbf16>
      %148 = vector.shape_cast %147 : vector<1x16x128xbf16> to vector<16x128xbf16>
      %149 = arith.extf %148 : vector<16x128xbf16> to vector<16x128xf32>
      %150 = arith.truncf %145 : vector<16x32xf32> to vector<16x32xbf16>
      %c0_39 = arith.constant 0 : index
      %c0_40 = arith.constant 0 : index
      %151 = vector.load %arg6[%c0_39, %c0_40] : memref<32x128xbf16, #tpu.memory_space<vmem>>, vector<32x128xbf16>
      %cst_41 = arith.constant dense<0.000000e+00> : vector<16x128xf32>
      %152 = tpu.matmul %150, %151, %cst_41 {dimension_numbers = #tpu.dot_dimension_numbers<[1], [0], [0], [1], [0, 0, 1, 1], [], []>} : vector<16x32xbf16>, vector<32x128xbf16>, vector<16x128xf32> -> vector<16x128xf32>
      %153 = arith.addf %152, %8 : vector<16x128xf32>
      %154 = vector.extract_strided_slice %149 {offsets = [0, 0], sizes = [16, 32], strides = [1, 1]} : vector<16x128xf32> to vector<16x32xf32>
      %155 = vector.extract_strided_slice %153 {offsets = [0, 0], sizes = [16, 32], strides = [1, 1]} : vector<16x128xf32> to vector<16x32xf32>
      %156 = arith.addf %154, %155 : vector<16x32xf32>
      %157 = arith.negf %156 : vector<16x32xf32>
      %158 = math.exp %157 : vector<16x32xf32>
      %cst_42 = arith.constant 1.000000e+00 : f32
      %159 = vector.broadcast %cst_42 : f32 to vector<16x32xf32>
      %160 = arith.addf %159, %158 : vector<16x32xf32>
      %161 = arith.divf %159, %160 : vector<16x32xf32>
      %162 = vector.extract_strided_slice %149 {offsets = [0, 32], sizes = [16, 32], strides = [1, 1]} : vector<16x128xf32> to vector<16x32xf32>
      %163 = vector.extract_strided_slice %153 {offsets = [0, 32], sizes = [16, 32], strides = [1, 1]} : vector<16x128xf32> to vector<16x32xf32>
      %164 = arith.addf %162, %163 : vector<16x32xf32>
      %165 = arith.negf %164 : vector<16x32xf32>
      %166 = math.exp %165 : vector<16x32xf32>
      %cst_43 = arith.constant 1.000000e+00 : f32
      %167 = vector.broadcast %cst_43 : f32 to vector<16x32xf32>
      %168 = arith.addf %167, %166 : vector<16x32xf32>
      %169 = arith.divf %167, %168 : vector<16x32xf32>
      %170 = vector.extract_strided_slice %149 {offsets = [0, 64], sizes = [16, 32], strides = [1, 1]} : vector<16x128xf32> to vector<16x32xf32>
      %171 = vector.extract_strided_slice %153 {offsets = [0, 64], sizes = [16, 32], strides = [1, 1]} : vector<16x128xf32> to vector<16x32xf32>
      %172 = arith.mulf %161, %171 : vector<16x32xf32>
      %173 = arith.addf %170, %172 : vector<16x32xf32>
      %174 = math.tanh %173 : vector<16x32xf32>
      %cst_44 = arith.constant 1.000000e+00 : f32
      %175 = vector.broadcast %cst_44 : f32 to vector<16x32xf32>
      %176 = arith.subf %175, %169 : vector<16x32xf32>
      %177 = arith.mulf %176, %174 : vector<16x32xf32>
      %178 = arith.mulf %169, %145 : vector<16x32xf32>
      %179 = arith.addf %177, %178 : vector<16x32xf32>
      %c5_i32 = arith.constant 5 : i32
      %180 = arith.index_cast %c5_i32 : i32 to index
      %c0_45 = arith.constant 0 : index
      %c0_46 = arith.constant 0 : index
      %181 = vector.load %arg2[%180, %c0_45, %c0_46] : memref<10x16x128xbf16, #tpu.memory_space<vmem>>, vector<1x16x128xbf16>
      %182 = vector.shape_cast %181 : vector<1x16x128xbf16> to vector<16x128xbf16>
      %183 = arith.extf %182 : vector<16x128xbf16> to vector<16x128xf32>
      %184 = arith.truncf %179 : vector<16x32xf32> to vector<16x32xbf16>
      %c0_47 = arith.constant 0 : index
      %c0_48 = arith.constant 0 : index
      %185 = vector.load %arg6[%c0_47, %c0_48] : memref<32x128xbf16, #tpu.memory_space<vmem>>, vector<32x128xbf16>
      %cst_49 = arith.constant dense<0.000000e+00> : vector<16x128xf32>
      %186 = tpu.matmul %184, %185, %cst_49 {dimension_numbers = #tpu.dot_dimension_numbers<[1], [0], [0], [1], [0, 0, 1, 1], [], []>} : vector<16x32xbf16>, vector<32x128xbf16>, vector<16x128xf32> -> vector<16x128xf32>
      %187 = arith.addf %186, %8 : vector<16x128xf32>
      %188 = vector.extract_strided_slice %183 {offsets = [0, 0], sizes = [16, 32], strides = [1, 1]} : vector<16x128xf32> to vector<16x32xf32>
      %189 = vector.extract_strided_slice %187 {offsets = [0, 0], sizes = [16, 32], strides = [1, 1]} : vector<16x128xf32> to vector<16x32xf32>
      %190 = arith.addf %188, %189 : vector<16x32xf32>
      %191 = arith.negf %190 : vector<16x32xf32>
      %192 = math.exp %191 : vector<16x32xf32>
      %cst_50 = arith.constant 1.000000e+00 : f32
      %193 = vector.broadcast %cst_50 : f32 to vector<16x32xf32>
      %194 = arith.addf %193, %192 : vector<16x32xf32>
      %195 = arith.divf %193, %194 : vector<16x32xf32>
      %196 = vector.extract_strided_slice %183 {offsets = [0, 32], sizes = [16, 32], strides = [1, 1]} : vector<16x128xf32> to vector<16x32xf32>
      %197 = vector.extract_strided_slice %187 {offsets = [0, 32], sizes = [16, 32], strides = [1, 1]} : vector<16x128xf32> to vector<16x32xf32>
      %198 = arith.addf %196, %197 : vector<16x32xf32>
      %199 = arith.negf %198 : vector<16x32xf32>
      %200 = math.exp %199 : vector<16x32xf32>
      %cst_51 = arith.constant 1.000000e+00 : f32
      %201 = vector.broadcast %cst_51 : f32 to vector<16x32xf32>
      %202 = arith.addf %201, %200 : vector<16x32xf32>
      %203 = arith.divf %201, %202 : vector<16x32xf32>
      %204 = vector.extract_strided_slice %183 {offsets = [0, 64], sizes = [16, 32], strides = [1, 1]} : vector<16x128xf32> to vector<16x32xf32>
      %205 = vector.extract_strided_slice %187 {offsets = [0, 64], sizes = [16, 32], strides = [1, 1]} : vector<16x128xf32> to vector<16x32xf32>
      %206 = arith.mulf %195, %205 : vector<16x32xf32>
      %207 = arith.addf %204, %206 : vector<16x32xf32>
      %208 = math.tanh %207 : vector<16x32xf32>
      %cst_52 = arith.constant 1.000000e+00 : f32
      %209 = vector.broadcast %cst_52 : f32 to vector<16x32xf32>
      %210 = arith.subf %209, %203 : vector<16x32xf32>
      %211 = arith.mulf %210, %208 : vector<16x32xf32>
      %212 = arith.mulf %203, %179 : vector<16x32xf32>
      %213 = arith.addf %211, %212 : vector<16x32xf32>
      %c6_i32 = arith.constant 6 : i32
      %214 = arith.index_cast %c6_i32 : i32 to index
      %c0_53 = arith.constant 0 : index
      %c0_54 = arith.constant 0 : index
      %215 = vector.load %arg2[%214, %c0_53, %c0_54] : memref<10x16x128xbf16, #tpu.memory_space<vmem>>, vector<1x16x128xbf16>
      %216 = vector.shape_cast %215 : vector<1x16x128xbf16> to vector<16x128xbf16>
      %217 = arith.extf %216 : vector<16x128xbf16> to vector<16x128xf32>
      %218 = arith.truncf %213 : vector<16x32xf32> to vector<16x32xbf16>
      %c0_55 = arith.constant 0 : index
      %c0_56 = arith.constant 0 : index
      %219 = vector.load %arg6[%c0_55, %c0_56] : memref<32x128xbf16, #tpu.memory_space<vmem>>, vector<32x128xbf16>
      %cst_57 = arith.constant dense<0.000000e+00> : vector<16x128xf32>
      %220 = tpu.matmul %218, %219, %cst_57 {dimension_numbers = #tpu.dot_dimension_numbers<[1], [0], [0], [1], [0, 0, 1, 1], [], []>} : vector<16x32xbf16>, vector<32x128xbf16>, vector<16x128xf32> -> vector<16x128xf32>
      %221 = arith.addf %220, %8 : vector<16x128xf32>
      %222 = vector.extract_strided_slice %217 {offsets = [0, 0], sizes = [16, 32], strides = [1, 1]} : vector<16x128xf32> to vector<16x32xf32>
      %223 = vector.extract_strided_slice %221 {offsets = [0, 0], sizes = [16, 32], strides = [1, 1]} : vector<16x128xf32> to vector<16x32xf32>
      %224 = arith.addf %222, %223 : vector<16x32xf32>
      %225 = arith.negf %224 : vector<16x32xf32>
      %226 = math.exp %225 : vector<16x32xf32>
      %cst_58 = arith.constant 1.000000e+00 : f32
      %227 = vector.broadcast %cst_58 : f32 to vector<16x32xf32>
      %228 = arith.addf %227, %226 : vector<16x32xf32>
      %229 = arith.divf %227, %228 : vector<16x32xf32>
      %230 = vector.extract_strided_slice %217 {offsets = [0, 32], sizes = [16, 32], strides = [1, 1]} : vector<16x128xf32> to vector<16x32xf32>
      %231 = vector.extract_strided_slice %221 {offsets = [0, 32], sizes = [16, 32], strides = [1, 1]} : vector<16x128xf32> to vector<16x32xf32>
      %232 = arith.addf %230, %231 : vector<16x32xf32>
      %233 = arith.negf %232 : vector<16x32xf32>
      %234 = math.exp %233 : vector<16x32xf32>
      %cst_59 = arith.constant 1.000000e+00 : f32
      %235 = vector.broadcast %cst_59 : f32 to vector<16x32xf32>
      %236 = arith.addf %235, %234 : vector<16x32xf32>
      %237 = arith.divf %235, %236 : vector<16x32xf32>
      %238 = vector.extract_strided_slice %217 {offsets = [0, 64], sizes = [16, 32], strides = [1, 1]} : vector<16x128xf32> to vector<16x32xf32>
      %239 = vector.extract_strided_slice %221 {offsets = [0, 64], sizes = [16, 32], strides = [1, 1]} : vector<16x128xf32> to vector<16x32xf32>
      %240 = arith.mulf %229, %239 : vector<16x32xf32>
      %241 = arith.addf %238, %240 : vector<16x32xf32>
      %242 = math.tanh %241 : vector<16x32xf32>
      %cst_60 = arith.constant 1.000000e+00 : f32
      %243 = vector.broadcast %cst_60 : f32 to vector<16x32xf32>
      %244 = arith.subf %243, %237 : vector<16x32xf32>
      %245 = arith.mulf %244, %242 : vector<16x32xf32>
      %246 = arith.mulf %237, %213 : vector<16x32xf32>
      %247 = arith.addf %245, %246 : vector<16x32xf32>
      %c7_i32 = arith.constant 7 : i32
      %248 = arith.index_cast %c7_i32 : i32 to index
      %c0_61 = arith.constant 0 : index
      %c0_62 = arith.constant 0 : index
      %249 = vector.load %arg2[%248, %c0_61, %c0_62] : memref<10x16x128xbf16, #tpu.memory_space<vmem>>, vector<1x16x128xbf16>
      %250 = vector.shape_cast %249 : vector<1x16x128xbf16> to vector<16x128xbf16>
      %251 = arith.extf %250 : vector<16x128xbf16> to vector<16x128xf32>
      %252 = arith.truncf %247 : vector<16x32xf32> to vector<16x32xbf16>
      %c0_63 = arith.constant 0 : index
      %c0_64 = arith.constant 0 : index
      %253 = vector.load %arg6[%c0_63, %c0_64] : memref<32x128xbf16, #tpu.memory_space<vmem>>, vector<32x128xbf16>
      %cst_65 = arith.constant dense<0.000000e+00> : vector<16x128xf32>
      %254 = tpu.matmul %252, %253, %cst_65 {dimension_numbers = #tpu.dot_dimension_numbers<[1], [0], [0], [1], [0, 0, 1, 1], [], []>} : vector<16x32xbf16>, vector<32x128xbf16>, vector<16x128xf32> -> vector<16x128xf32>
      %255 = arith.addf %254, %8 : vector<16x128xf32>
      %256 = vector.extract_strided_slice %251 {offsets = [0, 0], sizes = [16, 32], strides = [1, 1]} : vector<16x128xf32> to vector<16x32xf32>
      %257 = vector.extract_strided_slice %255 {offsets = [0, 0], sizes = [16, 32], strides = [1, 1]} : vector<16x128xf32> to vector<16x32xf32>
      %258 = arith.addf %256, %257 : vector<16x32xf32>
      %259 = arith.negf %258 : vector<16x32xf32>
      %260 = math.exp %259 : vector<16x32xf32>
      %cst_66 = arith.constant 1.000000e+00 : f32
      %261 = vector.broadcast %cst_66 : f32 to vector<16x32xf32>
      %262 = arith.addf %261, %260 : vector<16x32xf32>
      %263 = arith.divf %261, %262 : vector<16x32xf32>
      %264 = vector.extract_strided_slice %251 {offsets = [0, 32], sizes = [16, 32], strides = [1, 1]} : vector<16x128xf32> to vector<16x32xf32>
      %265 = vector.extract_strided_slice %255 {offsets = [0, 32], sizes = [16, 32], strides = [1, 1]} : vector<16x128xf32> to vector<16x32xf32>
      %266 = arith.addf %264, %265 : vector<16x32xf32>
      %267 = arith.negf %266 : vector<16x32xf32>
      %268 = math.exp %267 : vector<16x32xf32>
      %cst_67 = arith.constant 1.000000e+00 : f32
      %269 = vector.broadcast %cst_67 : f32 to vector<16x32xf32>
      %270 = arith.addf %269, %268 : vector<16x32xf32>
      %271 = arith.divf %269, %270 : vector<16x32xf32>
      %272 = vector.extract_strided_slice %251 {offsets = [0, 64], sizes = [16, 32], strides = [1, 1]} : vector<16x128xf32> to vector<16x32xf32>
      %273 = vector.extract_strided_slice %255 {offsets = [0, 64], sizes = [16, 32], strides = [1, 1]} : vector<16x128xf32> to vector<16x32xf32>
      %274 = arith.mulf %263, %273 : vector<16x32xf32>
      %275 = arith.addf %272, %274 : vector<16x32xf32>
      %276 = math.tanh %275 : vector<16x32xf32>
      %cst_68 = arith.constant 1.000000e+00 : f32
      %277 = vector.broadcast %cst_68 : f32 to vector<16x32xf32>
      %278 = arith.subf %277, %271 : vector<16x32xf32>
      %279 = arith.mulf %278, %276 : vector<16x32xf32>
      %280 = arith.mulf %271, %247 : vector<16x32xf32>
      %281 = arith.addf %279, %280 : vector<16x32xf32>
      %c8_i32 = arith.constant 8 : i32
      %282 = arith.index_cast %c8_i32 : i32 to index
      %c0_69 = arith.constant 0 : index
      %c0_70 = arith.constant 0 : index
      %283 = vector.load %arg2[%282, %c0_69, %c0_70] : memref<10x16x128xbf16, #tpu.memory_space<vmem>>, vector<1x16x128xbf16>
      %284 = vector.shape_cast %283 : vector<1x16x128xbf16> to vector<16x128xbf16>
      %285 = arith.extf %284 : vector<16x128xbf16> to vector<16x128xf32>
      %286 = arith.truncf %281 : vector<16x32xf32> to vector<16x32xbf16>
      %c0_71 = arith.constant 0 : index
      %c0_72 = arith.constant 0 : index
      %287 = vector.load %arg6[%c0_71, %c0_72] : memref<32x128xbf16, #tpu.memory_space<vmem>>, vector<32x128xbf16>
      %cst_73 = arith.constant dense<0.000000e+00> : vector<16x128xf32>
      %288 = tpu.matmul %286, %287, %cst_73 {dimension_numbers = #tpu.dot_dimension_numbers<[1], [0], [0], [1], [0, 0, 1, 1], [], []>} : vector<16x32xbf16>, vector<32x128xbf16>, vector<16x128xf32> -> vector<16x128xf32>
      %289 = arith.addf %288, %8 : vector<16x128xf32>
      %290 = vector.extract_strided_slice %285 {offsets = [0, 0], sizes = [16, 32], strides = [1, 1]} : vector<16x128xf32> to vector<16x32xf32>
      %291 = vector.extract_strided_slice %289 {offsets = [0, 0], sizes = [16, 32], strides = [1, 1]} : vector<16x128xf32> to vector<16x32xf32>
      %292 = arith.addf %290, %291 : vector<16x32xf32>
      %293 = arith.negf %292 : vector<16x32xf32>
      %294 = math.exp %293 : vector<16x32xf32>
      %cst_74 = arith.constant 1.000000e+00 : f32
      %295 = vector.broadcast %cst_74 : f32 to vector<16x32xf32>
      %296 = arith.addf %295, %294 : vector<16x32xf32>
      %297 = arith.divf %295, %296 : vector<16x32xf32>
      %298 = vector.extract_strided_slice %285 {offsets = [0, 32], sizes = [16, 32], strides = [1, 1]} : vector<16x128xf32> to vector<16x32xf32>
      %299 = vector.extract_strided_slice %289 {offsets = [0, 32], sizes = [16, 32], strides = [1, 1]} : vector<16x128xf32> to vector<16x32xf32>
      %300 = arith.addf %298, %299 : vector<16x32xf32>
      %301 = arith.negf %300 : vector<16x32xf32>
      %302 = math.exp %301 : vector<16x32xf32>
      %cst_75 = arith.constant 1.000000e+00 : f32
      %303 = vector.broadcast %cst_75 : f32 to vector<16x32xf32>
      %304 = arith.addf %303, %302 : vector<16x32xf32>
      %305 = arith.divf %303, %304 : vector<16x32xf32>
      %306 = vector.extract_strided_slice %285 {offsets = [0, 64], sizes = [16, 32], strides = [1, 1]} : vector<16x128xf32> to vector<16x32xf32>
      %307 = vector.extract_strided_slice %289 {offsets = [0, 64], sizes = [16, 32], strides = [1, 1]} : vector<16x128xf32> to vector<16x32xf32>
      %308 = arith.mulf %297, %307 : vector<16x32xf32>
      %309 = arith.addf %306, %308 : vector<16x32xf32>
      %310 = math.tanh %309 : vector<16x32xf32>
      %cst_76 = arith.constant 1.000000e+00 : f32
      %311 = vector.broadcast %cst_76 : f32 to vector<16x32xf32>
      %312 = arith.subf %311, %305 : vector<16x32xf32>
      %313 = arith.mulf %312, %310 : vector<16x32xf32>
      %314 = arith.mulf %305, %281 : vector<16x32xf32>
      %315 = arith.addf %313, %314 : vector<16x32xf32>
      %c9_i32 = arith.constant 9 : i32
      %316 = arith.index_cast %c9_i32 : i32 to index
      %c0_77 = arith.constant 0 : index
      %c0_78 = arith.constant 0 : index
      %317 = vector.load %arg2[%316, %c0_77, %c0_78] : memref<10x16x128xbf16, #tpu.memory_space<vmem>>, vector<1x16x128xbf16>
      %318 = vector.shape_cast %317 : vector<1x16x128xbf16> to vector<16x128xbf16>
      %319 = arith.extf %318 : vector<16x128xbf16> to vector<16x128xf32>
      %320 = arith.truncf %315 : vector<16x32xf32> to vector<16x32xbf16>
      %c0_79 = arith.constant 0 : index
      %c0_80 = arith.constant 0 : index
      %321 = vector.load %arg6[%c0_79, %c0_80] : memref<32x128xbf16, #tpu.memory_space<vmem>>, vector<32x128xbf16>
      %cst_81 = arith.constant dense<0.000000e+00> : vector<16x128xf32>
      %322 = tpu.matmul %320, %321, %cst_81 {dimension_numbers = #tpu.dot_dimension_numbers<[1], [0], [0], [1], [0, 0, 1, 1], [], []>} : vector<16x32xbf16>, vector<32x128xbf16>, vector<16x128xf32> -> vector<16x128xf32>
      %323 = arith.addf %322, %8 : vector<16x128xf32>
      %324 = vector.extract_strided_slice %319 {offsets = [0, 0], sizes = [16, 32], strides = [1, 1]} : vector<16x128xf32> to vector<16x32xf32>
      %325 = vector.extract_strided_slice %323 {offsets = [0, 0], sizes = [16, 32], strides = [1, 1]} : vector<16x128xf32> to vector<16x32xf32>
      %326 = arith.addf %324, %325 : vector<16x32xf32>
      %327 = arith.negf %326 : vector<16x32xf32>
      %328 = math.exp %327 : vector<16x32xf32>
      %cst_82 = arith.constant 1.000000e+00 : f32
      %329 = vector.broadcast %cst_82 : f32 to vector<16x32xf32>
      %330 = arith.addf %329, %328 : vector<16x32xf32>
      %331 = arith.divf %329, %330 : vector<16x32xf32>
      %332 = vector.extract_strided_slice %319 {offsets = [0, 32], sizes = [16, 32], strides = [1, 1]} : vector<16x128xf32> to vector<16x32xf32>
      %333 = vector.extract_strided_slice %323 {offsets = [0, 32], sizes = [16, 32], strides = [1, 1]} : vector<16x128xf32> to vector<16x32xf32>
      %334 = arith.addf %332, %333 : vector<16x32xf32>
      %335 = arith.negf %334 : vector<16x32xf32>
      %336 = math.exp %335 : vector<16x32xf32>
      %cst_83 = arith.constant 1.000000e+00 : f32
      %337 = vector.broadcast %cst_83 : f32 to vector<16x32xf32>
      %338 = arith.addf %337, %336 : vector<16x32xf32>
      %339 = arith.divf %337, %338 : vector<16x32xf32>
      %340 = vector.extract_strided_slice %319 {offsets = [0, 64], sizes = [16, 32], strides = [1, 1]} : vector<16x128xf32> to vector<16x32xf32>
      %341 = vector.extract_strided_slice %323 {offsets = [0, 64], sizes = [16, 32], strides = [1, 1]} : vector<16x128xf32> to vector<16x32xf32>
      %342 = arith.mulf %331, %341 : vector<16x32xf32>
      %343 = arith.addf %340, %342 : vector<16x32xf32>
      %344 = math.tanh %343 : vector<16x32xf32>
      %cst_84 = arith.constant 1.000000e+00 : f32
      %345 = vector.broadcast %cst_84 : f32 to vector<16x32xf32>
      %346 = arith.subf %345, %339 : vector<16x32xf32>
      %347 = arith.mulf %346, %344 : vector<16x32xf32>
      %348 = arith.mulf %339, %315 : vector<16x32xf32>
      %349 = arith.addf %347, %348 : vector<16x32xf32>
      %c10_i32 = arith.constant 10 : i32
      %350 = arith.truncf %349 : vector<16x32xf32> to vector<16x32xbf16>
      %c0_85 = arith.constant 0 : index
      %c0_86 = arith.constant 0 : index
      %351 = vector.load %arg16[%c0_85, %c0_86] : memref<16x32xf32, #tpu.memory_space<vmem>>, vector<16x32xf32>
      tpu.vector_store %arg16[%c0_85, %c0_86], %349 {strides = array<i32>} : memref<16x32xf32, #tpu.memory_space<vmem>>, vector<16x32xf32>,
      %c0_87 = arith.constant 0 : index
      %c0_88 = arith.constant 0 : index
      %352 = vector.load %arg8[%c0_87, %c0_88] : memref<32x128xbf16, #tpu.memory_space<vmem>>, vector<32x128xbf16>
      %cst_89 = arith.constant dense<0.000000e+00> : vector<16x128xf32>
      %353 = tpu.matmul %350, %352, %cst_89 {dimension_numbers = #tpu.dot_dimension_numbers<[1], [0], [0], [1], [0, 0, 1, 1], [], []>} : vector<16x32xbf16>, vector<32x128xbf16>, vector<16x128xf32> -> vector<16x128xf32>
      %c0_90 = arith.constant 0 : index
      %c0_91 = arith.constant 0 : index
      %354 = vector.load %arg10[%c0_90, %c0_91] : memref<1x128xf32, #tpu.memory_space<vmem>>, vector<1x128xf32>
      %355 = vector.broadcast %354 : vector<1x128xf32> to vector<16x128xf32>
      %356 = arith.addf %353, %355 : vector<16x128xf32>
      %c0_92 = arith.constant 0 : index
      %c0_93 = arith.constant 0 : index
      %357 = vector.load %arg17[%c0_92, %c0_93] : memref<16x128xf32, #tpu.memory_space<vmem>>, vector<16x128xf32>
      tpu.vector_store %arg17[%c0_92, %c0_93], %356 {strides = array<i32>} : memref<16x128xf32, #tpu.memory_space<vmem>>, vector<16x128xf32>,
      %c0_94 = arith.constant 0 : index
      %c0_95 = arith.constant 0 : index
      %358 = vector.load %arg13[%c0_94, %c0_95] : memref<32x128xbf16, #tpu.memory_space<vmem>>, vector<32x128xbf16>
      %cst_96 = arith.constant dense<0.000000e+00> : vector<16x128xf32>
      %359 = tpu.matmul %350, %358, %cst_96 {dimension_numbers = #tpu.dot_dimension_numbers<[1], [0], [0], [1], [0, 0, 1, 1], [], []>} : vector<16x32xbf16>, vector<32x128xbf16>, vector<16x128xf32> -> vector<16x128xf32>
      %c0_97 = arith.constant 0 : index
      %c0_98 = arith.constant 0 : index
      %360 = vector.load %arg14[%c0_97, %c0_98] : memref<1x128xf32, #tpu.memory_space<vmem>>, vector<1x128xf32>
      %361 = vector.broadcast %360 : vector<1x128xf32> to vector<16x128xf32>
      %362 = arith.addf %359, %361 : vector<16x128xf32>
      %c0_99 = arith.constant 0 : index
      %c0_100 = arith.constant 0 : index
      %363 = vector.load %arg18[%c0_99, %c0_100] : memref<16x128xf32, #tpu.memory_space<vmem>>, vector<16x128xf32>
      tpu.vector_store %arg18[%c0_99, %c0_100], %362 {strides = array<i32>} : memref<16x128xf32, #tpu.memory_space<vmem>>, vector<16x128xf32>,
      %c0_101 = arith.constant 0 : index
      %c0_102 = arith.constant 0 : index
      %c0_103 = arith.constant 0 : index
      %364 = vector.load %arg3[%c0_101, %c0_102, %c0_103] : memref<1x16x256xbf16, #tpu.memory_space<vmem>>, vector<1x16x256xbf16>
      %365 = vector.shape_cast %364 : vector<1x16x256xbf16> to vector<16x256xbf16>
      %366 = arith.extf %365 : vector<16x256xbf16> to vector<16x256xf32>
      %c0_104 = arith.constant 0 : index
      %c0_105 = arith.constant 0 : index
      %367 = vector.load %arg19[%c0_104, %c0_105] : memref<16x256xf32, #tpu.memory_space<vmem>>, vector<16x256xf32>
      tpu.vector_store %arg19[%c0_104, %c0_105], %366 {strides = array<i32>} : memref<16x256xf32, #tpu.memory_space<vmem>>, vector<16x256xf32>,
      %cst_106 = arith.constant 0.000000e+00 : f32
      %368 = vector.broadcast %cst_106 : f32 to vector<16x128xf32>
      %c0_107 = arith.constant 0 : index
      %c0_108 = arith.constant 0 : index
      %c0_109 = arith.constant 0 : index
      %369 = vector.load %arg15[%c0_107, %c0_108, %c0_109] : memref<1x16x128xf32, #tpu.memory_space<vmem>>, vector<1x16x128xf32>
      %370 = vector.shape_cast %369 : vector<1x16x128xf32> to vector<16x128xf32>
      %371 = vector.shape_cast %368 : vector<16x128xf32> to vector<1x16x128xf32>
      tpu.vector_store %arg15[%c0_107, %c0_108, %c0_109], %371 {strides = array<i32>} : memref<1x16x128xf32, #tpu.memory_space<vmem>>, vector<1x16x128xf32>,
    } else {
    }
    %c0_i32_1 = arith.constant 0 : i32
    %3 = arith.cmpi sgt, %arg0, %c0_i32_1 : i32
    %4 = arith.extui %3 : i1 to i32
    %c0_i32_2 = arith.constant 0 : i32
    %5 = arith.cmpi ne, %4, %c0_i32_2 : i32
    scf.if %5 {
      %c0 = arith.constant 0 : index
      %c0_3 = arith.constant 0 : index
      %6 = vector.load %arg16[%c0, %c0_3] : memref<16x32xf32, #tpu.memory_space<vmem>>, vector<16x32xf32>
      %c0_4 = arith.constant 0 : index
      %c0_5 = arith.constant 0 : index
      %7 = vector.load %arg19[%c0_4, %c0_5] : memref<16x256xf32, #tpu.memory_space<vmem>>, vector<16x256xf32>
      %8 = vector.extract_strided_slice %7 {offsets = [0, 0], sizes = [16, 128], strides = [1, 1]} : vector<16x256xf32> to vector<16x128xf32>
      %c0_6 = arith.constant 0 : index
      %c0_7 = arith.constant 0 : index
      %9 = vector.load %arg17[%c0_6, %c0_7] : memref<16x128xf32, #tpu.memory_space<vmem>>, vector<16x128xf32>
      %10 = arith.addf %8, %9 : vector<16x128xf32>
      %11 = arith.truncf %6 : vector<16x32xf32> to vector<16x32xbf16>
      %c0_8 = arith.constant 0 : index
      %c0_9 = arith.constant 0 : index
      %12 = vector.load %arg9[%c0_8, %c0_9] : memref<32x128xbf16, #tpu.memory_space<vmem>>, vector<32x128xbf16>
      %cst = arith.constant dense<0.000000e+00> : vector<16x128xf32>
      %13 = tpu.matmul %11, %12, %cst {dimension_numbers = #tpu.dot_dimension_numbers<[1], [0], [0], [1], [0, 0, 1, 1], [], []>} : vector<16x32xbf16>, vector<32x128xbf16>, vector<16x128xf32> -> vector<16x128xf32>
      %c0_10 = arith.constant 0 : index
      %c0_11 = arith.constant 0 : index
      %14 = vector.load %arg11[%c0_10, %c0_11] : memref<1x128xf32, #tpu.memory_space<vmem>>, vector<1x128xf32>
      %15 = vector.broadcast %14 : vector<1x128xf32> to vector<16x128xf32>
      %16 = arith.addf %13, %15 : vector<16x128xf32>
      %17 = vector.extract_strided_slice %10 {offsets = [0, 0], sizes = [16, 32], strides = [1, 1]} : vector<16x128xf32> to vector<16x32xf32>
      %18 = vector.extract_strided_slice %16 {offsets = [0, 0], sizes = [16, 32], strides = [1, 1]} : vector<16x128xf32> to vector<16x32xf32>
      %19 = arith.addf %17, %18 : vector<16x32xf32>
      %20 = arith.negf %19 : vector<16x32xf32>
      %21 = math.exp %20 : vector<16x32xf32>
      %cst_12 = arith.constant 1.000000e+00 : f32
      %22 = vector.broadcast %cst_12 : f32 to vector<16x32xf32>
      %23 = arith.addf %22, %21 : vector<16x32xf32>
      %24 = arith.divf %22, %23 : vector<16x32xf32>
      %25 = vector.extract_strided_slice %10 {offsets = [0, 32], sizes = [16, 32], strides = [1, 1]} : vector<16x128xf32> to vector<16x32xf32>
      %26 = vector.extract_strided_slice %16 {offsets = [0, 32], sizes = [16, 32], strides = [1, 1]} : vector<16x128xf32> to vector<16x32xf32>
      %27 = arith.addf %25, %26 : vector<16x32xf32>
      %28 = arith.negf %27 : vector<16x32xf32>
      %29 = math.exp %28 : vector<16x32xf32>
      %cst_13 = arith.constant 1.000000e+00 : f32
      %30 = vector.broadcast %cst_13 : f32 to vector<16x32xf32>
      %31 = arith.addf %30, %29 : vector<16x32xf32>
      %32 = arith.divf %30, %31 : vector<16x32xf32>
      %33 = vector.extract_strided_slice %10 {offsets = [0, 64], sizes = [16, 32], strides = [1, 1]} : vector<16x128xf32> to vector<16x32xf32>
      %34 = vector.extract_strided_slice %16 {offsets = [0, 64], sizes = [16, 32], strides = [1, 1]} : vector<16x128xf32> to vector<16x32xf32>
      %35 = arith.mulf %24, %34 : vector<16x32xf32>
      %36 = arith.addf %33, %35 : vector<16x32xf32>
      %37 = math.tanh %36 : vector<16x32xf32>
      %cst_14 = arith.constant 1.000000e+00 : f32
      %38 = vector.broadcast %cst_14 : f32 to vector<16x32xf32>
      %39 = arith.subf %38, %32 : vector<16x32xf32>
      %40 = arith.mulf %39, %37 : vector<16x32xf32>
      %41 = arith.mulf %32, %6 : vector<16x32xf32>
      %42 = arith.addf %40, %41 : vector<16x32xf32>
      %43 = vector.extract_strided_slice %7 {offsets = [0, 128], sizes = [16, 128], strides = [1, 1]} : vector<16x256xf32> to vector<16x128xf32>
      %44 = arith.truncf %42 : vector<16x32xf32> to vector<16x32xbf16>
      %c0_15 = arith.constant 0 : index
      %c0_16 = arith.constant 0 : index
      %45 = vector.load %arg12[%c0_15, %c0_16] : memref<32x128xbf16, #tpu.memory_space<vmem>>, vector<32x128xbf16>
      %cst_17 = arith.constant dense<0.000000e+00> : vector<16x128xf32>
      %46 = tpu.matmul %44, %45, %cst_17 {dimension_numbers = #tpu.dot_dimension_numbers<[1], [0], [0], [1], [0, 0, 1, 1], [], []>} : vector<16x32xbf16>, vector<32x128xbf16>, vector<16x128xf32> -> vector<16x128xf32>
      %47 = arith.addf %43, %46 : vector<16x128xf32>
      %c0_18 = arith.constant 0 : index
      %c0_19 = arith.constant 0 : index
      %48 = vector.load %arg18[%c0_18, %c0_19] : memref<16x128xf32, #tpu.memory_space<vmem>>, vector<16x128xf32>
      %49 = arith.addf %47, %48 : vector<16x128xf32>
      %c0_20 = arith.constant 0 : index
      %c0_21 = arith.constant 0 : index
      %c0_22 = arith.constant 0 : index
      %50 = vector.load %arg15[%c0_20, %c0_21, %c0_22] : memref<1x16x128xf32, #tpu.memory_space<vmem>>, vector<1x16x128xf32>
      %51 = vector.shape_cast %50 : vector<1x16x128xf32> to vector<16x128xf32>
      %52 = vector.shape_cast %49 : vector<16x128xf32> to vector<1x16x128xf32>
      tpu.vector_store %arg15[%c0_20, %c0_21, %c0_22], %52 {strides = array<i32>} : memref<1x16x128xf32, #tpu.memory_space<vmem>>, vector<1x16x128xf32>,
      %c0_23 = arith.constant 0 : index
      %c0_24 = arith.constant 0 : index
      %53 = vector.load %arg16[%c0_23, %c0_24] : memref<16x32xf32, #tpu.memory_space<vmem>>, vector<16x32xf32>
      tpu.vector_store %arg16[%c0_23, %c0_24], %42 {strides = array<i32>} : memref<16x32xf32, #tpu.memory_space<vmem>>, vector<16x32xf32>,
      %54 = arith.index_cast %arg0 : i32 to index
      %55 = memref.load %arg1[%54] : memref<8xi32, #tpu.memory_space<smem>>
      %c0_i32_25 = arith.constant 0 : i32
      %56 = arith.cmpi sgt, %55, %c0_i32_25 : i32
      %57 = arith.extui %56 : i1 to i32
      %c0_i32_26 = arith.constant 0 : i32
      %58 = arith.cmpi ne, %57, %c0_i32_26 : i32
      %59 = scf.if %58 -> (vector<16x256xf32>) {
        %c0_29 = arith.constant 0 : index
        %c0_30 = arith.constant 0 : index
        %c0_31 = arith.constant 0 : index
        %61 = vector.load %arg3[%c0_29, %c0_30, %c0_31] : memref<1x16x256xbf16, #tpu.memory_space<vmem>>, vector<1x16x256xbf16>
        %62 = vector.shape_cast %61 : vector<1x16x256xbf16> to vector<16x256xbf16>
        %63 = arith.extf %62 : vector<16x256xbf16> to vector<16x256xf32>
        scf.yield %63 : vector<16x256xf32>
      } else {
        %61 = tpu.reduce_index %49 {axis = 1 : i32, kind = #tpu.reduction_kind<arg_max>} : vector<16x128xf32> -> vector<16xi32>
        %62 = vector.shape_cast %61 : vector<16xi32> to vector<16x1xi32>
        %63 = tpu.iota {dimensions = array<i32: 1>} : vector<16x128xi32>
        %64 = vector.broadcast %62 : vector<16x1xi32> to vector<16x128xi32>
        %65 = arith.cmpi eq, %63, %64 : vector<16x128xi32>
        %66 = arith.extui %65 : vector<16x128xi1> to vector<16x128xi32>
        %67 = arith.sitofp %66 : vector<16x128xi32> to vector<16x128xf32>
        %68 = arith.truncf %67 : vector<16x128xf32> to vector<16x128xbf16>
        %c0_29 = arith.constant 0 : index
        %c0_30 = arith.constant 0 : index
        %69 = vector.load %arg4[%c0_29, %c0_30] : memref<128x32xbf16, #tpu.memory_space<vmem>>, vector<128x32xbf16>
        %cst_31 = arith.constant dense<0.000000e+00> : vector<16x32xf32>
        %70 = tpu.matmul %68, %69, %cst_31 {dimension_numbers = #tpu.dot_dimension_numbers<[1], [0], [0], [1], [0, 0, 1, 1], [], []>} : vector<16x128xbf16>, vector<128x32xbf16>, vector<16x32xf32> -> vector<16x32xf32>
        %71 = arith.truncf %70 : vector<16x32xf32> to vector<16x32xbf16>
        %c0_32 = arith.constant 0 : index
        %c0_33 = arith.constant 0 : index
        %72 = vector.load %arg5[%c0_32, %c0_33] : memref<32x256xbf16, #tpu.memory_space<vmem>>, vector<32x256xbf16>
        %cst_34 = arith.constant dense<0.000000e+00> : vector<16x256xf32>
        %73 = tpu.matmul %71, %72, %cst_34 {dimension_numbers = #tpu.dot_dimension_numbers<[1], [0], [0], [1], [0, 0, 1, 1], [], []>} : vector<16x32xbf16>, vector<32x256xbf16>, vector<16x256xf32> -> vector<16x256xf32>
        scf.yield %73 : vector<16x256xf32>
      }
      %c0_27 = arith.constant 0 : index
      %c0_28 = arith.constant 0 : index
      %60 = vector.load %arg19[%c0_27, %c0_28] : memref<16x256xf32, #tpu.memory_space<vmem>>, vector<16x256xf32>
      tpu.vector_store %arg19[%c0_27, %c0_28], %59 {strides = array<i32>} : memref<16x256xf32, #tpu.memory_space<vmem>>, vector<16x256xf32>,
    } else {
    }
    return
  }
  func.func @transform_0(%arg0: i32, %arg1: memref<8xi32, #tpu.memory_space<smem>>) -> (i32, i32, i32) {
    %c0_i32 = arith.constant 0 : i32
    %c0_i32_0 = arith.constant 0 : i32
    %c0_i32_1 = arith.constant 0 : i32
    %c0_i32_2 = arith.constant 0 : i32
    return %c0_i32, %c0_i32_0, %c0_i32_1 : i32, i32, i32
  }
  func.func @transform_1(%arg0: i32, %arg1: memref<8xi32, #tpu.memory_space<smem>>) -> (i32, i32, i32) {
    %c0_i32 = arith.constant 0 : i32
    %c0_i32_0 = arith.constant 0 : i32
    %c0_i32_1 = arith.constant 0 : i32
    return %arg0, %c0_i32, %c0_i32_0 : i32, i32, i32
  }
  func.func @transform_2(%arg0: i32, %arg1: memref<8xi32, #tpu.memory_space<smem>>) -> (i32, i32) {
    %c0_i32 = arith.constant 0 : i32
    %c0_i32_0 = arith.constant 0 : i32
    %c0_i32_1 = arith.constant 0 : i32
    return %c0_i32, %c0_i32_0 : i32, i32
  }
  func.func @transform_3(%arg0: i32, %arg1: memref<8xi32, #tpu.memory_space<smem>>) -> (i32, i32) {
    %c0_i32 = arith.constant 0 : i32
    %c0_i32_0 = arith.constant 0 : i32
    %c0_i32_1 = arith.constant 0 : i32
    return %c0_i32, %c0_i32_0 : i32, i32
  }
  func.func @transform_4(%arg0: i32, %arg1: memref<8xi32, #tpu.memory_space<smem>>) -> (i32, i32) {
    %c0_i32 = arith.constant 0 : i32
    %c0_i32_0 = arith.constant 0 : i32
    %c0_i32_1 = arith.constant 0 : i32
    return %c0_i32, %c0_i32_0 : i32, i32
  }
  func.func @transform_5(%arg0: i32, %arg1: memref<8xi32, #tpu.memory_space<smem>>) -> (i32, i32) {
    %c0_i32 = arith.constant 0 : i32
    %c0_i32_0 = arith.constant 0 : i32
    %c0_i32_1 = arith.constant 0 : i32
    return %c0_i32, %c0_i32_0 : i32, i32
  }
  func.func @transform_6(%arg0: i32, %arg1: memref<8xi32, #tpu.memory_space<smem>>) -> (i32, i32) {
    %c0_i32 = arith.constant 0 : i32
    %c0_i32_0 = arith.constant 0 : i32
    %c0_i32_1 = arith.constant 0 : i32
    return %c0_i32, %c0_i32_0 : i32, i32
  }
  func.func @transform_7(%arg0: i32, %arg1: memref<8xi32, #tpu.memory_space<smem>>) -> (i32, i32) {
    %c0_i32 = arith.constant 0 : i32
    %c0_i32_0 = arith.constant 0 : i32
    %c0_i32_1 = arith.constant 0 : i32
    return %c0_i32, %c0_i32_0 : i32, i32
  }
  func.func @transform_8(%arg0: i32, %arg1: memref<8xi32, #tpu.memory_space<smem>>) -> (i32, i32) {
    %c0_i32 = arith.constant 0 : i32
    %c0_i32_0 = arith.constant 0 : i32
    %c0_i32_1 = arith.constant 0 : i32
    return %c0_i32, %c0_i32_0 : i32, i32
  }
  func.func @transform_9(%arg0: i32, %arg1: memref<8xi32, #tpu.memory_space<smem>>) -> (i32, i32) {
    %c0_i32 = arith.constant 0 : i32
    %c0_i32_0 = arith.constant 0 : i32
    %c0_i32_1 = arith.constant 0 : i32
    return %c0_i32, %c0_i32_0 : i32, i32
  }
  func.func @transform_10(%arg0: i32, %arg1: memref<8xi32, #tpu.memory_space<smem>>) -> (i32, i32) {
    %c0_i32 = arith.constant 0 : i32
    %c0_i32_0 = arith.constant 0 : i32
    %c0_i32_1 = arith.constant 0 : i32
    return %c0_i32, %c0_i32_0 : i32, i32
  }
  func.func @transform_11(%arg0: i32, %arg1: memref<8xi32, #tpu.memory_space<smem>>) -> (i32, i32) {
    %c0_i32 = arith.constant 0 : i32
    %c0_i32_0 = arith.constant 0 : i32
    %c0_i32_1 = arith.constant 0 : i32
    return %c0_i32, %c0_i32_0 : i32, i32
  }
  func.func @transform_12(%arg0: i32, %arg1: memref<8xi32, #tpu.memory_space<smem>>) -> (i32, i32) {
    %c0_i32 = arith.constant 0 : i32
    %c0_i32_0 = arith.constant 0 : i32
    %c0_i32_1 = arith.constant 0 : i32
    return %c0_i32, %c0_i32_0 : i32, i32
  }
  func.func @transform_13(%arg0: i32, %arg1: memref<8xi32, #tpu.memory_space<smem>>) -> (i32, i32, i32) {
    %c0_i32 = arith.constant 0 : i32
    %c0_i32_0 = arith.constant 0 : i32
    %c0_i32_1 = arith.constant 0 : i32
    return %arg0, %c0_i32, %c0_i32_0 : i32, i32, i32
  }
}

</mosaic_0001>

<bundles_post_ra>
// kernel: tpu_custom_call.1
= control target key start
LH: loop header
LB: loop body
LE: loop exit
PB: predicated region body
PF: predicated region fallthrough
CT: control target
= control target key end

     0   :  { %s3420_s29 = smov [#allocation7]   ;;  %s4086_s0 = inlined_call_operand.hbm [shape: s32[8], index: 0, kind: input, shape index: {}]   ;;  %s4087_s1 = inlined_call_operand.vmem [shape: bf16[10,16,128], index: 1, kind: input, shape index: {}]   ;;  %s4088_s2 = inlined_call_operand.hbm [shape: bf16[8,16,256], index: 2, kind: input, shape index: {}]   ;;  %s4089_s3 = inlined_call_operand.vmem [shape: bf16[128,32], index: 3, kind: input, shape index: {}]   ;;  %s4090_s4 = inlined_call_operand.hbm [shape: bf16[32,256], index: 4, kind: input, shape index: {}]   ;;  %s4091_s5 = inlined_call_operand.hbm [shape: bf16[32,128], index: 5, kind: input, shape index: {}]   ;;  %s4092_s6 = inlined_call_operand.hbm [shape: f32[1,128], index: 6, kind: input, shape index: {}]   ;;  %s4093_s7 = inlined_call_operand.hbm [shape: bf16[32,128], index: 7, kind: input, shape index: {}]   ;;  %s4094_s8 = inlined_call_operand.hbm [shape: bf16[32,128], index: 8, kind: input, shape index: {}]   ;;  %s4095_s9 = inlined_call_operand.hbm [shape: f32[1,128], index: 9, kind: input, shape index: {}]   ;;  %s4096_s10 = inlined_call_operand.vmem [shape: f32[1,128], index: 10, kind: input, shape index: {}]   ;;  %s4097_s11 = inlined_call_operand.vmem [shape: bf16[32,128], index: 11, kind: input, shape index: {}]   ;;  %s4098_s12 = inlined_call_operand.hbm [shape: bf16[32,128], index: 12, kind: input, shape index: {}]   ;;  %s4099_s13 = inlined_call_operand.vmem [shape: f32[1,128], index: 13, kind: input, shape index: {}]   ;;  %s4100_s14 = inlined_call_operand.hbm [shape: f32[8,16,128], index: 14, kind: output, shape index: {}]  }
   0x1   :  { %4109 = sst [smem:[#allocation30_spill]] %s4089_s3 }
   0x2   :  { %4110 = sst [smem:[#allocation31_spill]] %s4090_s4 }
   0x3   :  { %4111 = sst [smem:[#allocation32_spill]] %s4091_s5 }
   0x4   :  { %4112 = sst [smem:[#allocation33_spill]] %s4092_s6 }
   0x5   :  { %4113 = sst [smem:[#allocation34_spill]] %s4093_s7 }
   0x6   :  { %4114 = sst [smem:[#allocation35_spill]] %s4094_s8 }
   0x7   :  { %4115 = sst [smem:[#allocation36_spill]] %s4100_s14 }
   0x8   :  { %20 = dma.hbm_to_smem %s4086_s0, 16, %s3420_s29, [#allocation6] }
   0x9   :  { %3362 = dma.done.wait [#allocation6], 16 }
   0xa   :  { %3363 = vsyncadd [#allocation6], 4294967280 }
   0xb   :  { %22 = sfence }
   0xc   :  { %23 = vsyncpa [#allocation9], 0 }
   0xd   :  { %25 = vsyncpa [#allocation9 + $0x1], 0 }
   0xe   :  { %26 = vsyncpa [#allocation12], 0 }
   0xf   :  { %27 = vsyncpa [#allocation15], 0 }
  0x10   :  { %28 = vsyncpa [#allocation18], 0 }
  0x11   :  { %29 = vsyncpa [#allocation21], 0 }
  0x12   :  { %30 = vsyncpa [#allocation10], 0 }
  0x13   :  { %32 = vsyncpa [#allocation10 + $0x1], 0  ;;  %s3528_s16 = smov 0   ;;  %s3530_s17 = smov 0  }
  0x14   :  { %s3532_s18 = smov 0   ;;  %s3534_s19 = smov 0  }
  0x15 LB: > { %s3421_s0 = smov [#allocation11]   ;;  %s3549_s21 = sadd.s32 4294967295, %s3402_s19   ;;  %s3402_s19 = sphi %s3534_s19, %s4149_s19   ;;  %s3398_s18 = sphi %s3532_s18, %s4148_s18   ;;  %s3394_s17 = sphi %s3530_s17, %s4147_s17   ;;  %s3390_s16 = sphi %s3528_s16, %s4146_s16  }
  0x16   : > { %s365_s20 = sshll.u32 %s3421_s0, 4  ;;  %p2392_p0 = scmp.ge.s32.totalorder %s3402_s19, 1  ;;  %s366_s20 = int_to_ptr.vmem [resolvable:$true] %s365_s20 }
  0x17   : > { %p4103_p1 = scmp.eq.s32.totalorder %s3549_s21, 0  ;;  %p347_p2 = scmp.lt.s32.totalorder %s3402_s19, 9 }
  0x18   : > { %s3422_s23 = smov [#allocation14]   ;;  %s3423_s26 = smov [#allocation17]  }
  0x19   : > { %p3555_p4 = pnand %p2392_p0, %p347_p2  ;;  %s392_s24 = sshll.u32 %s3422_s23, 4  ;;  %s393_s24 = int_to_ptr.vmem [resolvable:$true] %s392_s24 }
  0x1a   : > { %s415_s27 = sshll.u32 %s3423_s26, 4  ;;  %s3105_s29 = scalar_lea.vmem %s366_s20, 512  ;;  %s416_s27 = int_to_ptr.vmem [resolvable:$true] %s415_s27 }
  0x1b   : > { %s4116_s22 = scalar_select %p3555_p4, 1, 0 }
  0x1c   : > { %p2789_p5 = pneg %p3555_p4  ;;  %p3106_p8 = scmp.ne.s32.totalorder %s366_s20, %s3105_s29 }
  0x1d   : > { %p3113_p11 = scmp.lt.s32.totalorder %s366_s20, %s366_s20  ;;  %p3114_p12 = scmp.lt.s32.totalorder %s3105_s29, %s3105_s29 }
  0x1e   : > { %p3563_p6 = pnand %p2789_p5, %p4103_p1 }
  0x1f   : > { %p3115_p13 = por %p3114_p12, %p3113_p11 }
  0x20   : > { %p3569_p7 = pneg %p3563_p6 }
  0x22   : > { %p3108_p9 = pnand %p3106_p8, %p3569_p7 }
  0x24   : > { %p3109_p10 = pneg %p3108_p9 }
  0x26   : > { %p3116_p0 = pnand %p3115_p13, %p3109_p10 }
  0x28   : > { %3119 = shalt.err (!%p3116_p0)
}
  0x29   : > { %s4105_s30 = smov 128   ;;  %s4106_s15 = smov 8  }
  0x2a   : > { %s4119_s4 = sld [smem:[#allocation31_spill]]  ;;  %s3131_s26 = scalar_lea.vmem %s393_s24, 16 }
  0x2b   : > { %p3132_p2 = scmp.ne.s32.totalorder %s393_s24, %s3131_s26  ;;  %s3138_s29 = scalar_lea.vmem %s393_s24, 32 }
  0x2c   : > { %p3139_p9 = scmp.lt.s32.totalorder %s393_s24, %s393_s24  ;;  %p3140_p10 = scmp.lt.s32.totalorder %s3138_s29, %s3131_s26 }
  0x2d   : > { %p3134_p5 = pnand %p3132_p2, %p3569_p7 }
  0x2e   : > { %p3141_p11 = por %p3140_p10, %p3139_p9 }
  0x2f   : > { %p3135_p8 = pneg %p3134_p5 }
  0x30   : > { %2792 = dma.hbm_to_vmem [thread:$0]  (!%p3563_p6), %s4119_s4, 512, %s366_s20, [#allocation12], %s4105_s30, %s4105_s30, %s4106_s15  }
  0x31   : > { %p3142_p12 = pnand %p3141_p11, %p3135_p8 }
  0x33   : > { %3145 = shalt.err (!%p3142_p12)
}
  0x34   : > { %s4120_s6 = sld [smem:[#allocation33_spill]]  ;;  %s3157_s20 = scalar_lea.vmem %s416_s27, 256 }
  0x35   : > { %p3158_p13 = scmp.ne.s32.totalorder %s416_s27, %s3157_s20  ;;  %p3165_p5 = scmp.lt.s32.totalorder %s416_s27, %s416_s27 }
  0x36   : > { %p3166_p3 = scmp.lt.s32.totalorder %s3157_s20, %s3157_s20 }
  0x37   : > { %p3160_p0 = pnand %p3158_p13, %p3569_p7 }
  0x38   : > { %p3167_p1 = por %p3166_p3, %p3165_p5 }
  0x39   : > { %p3161_p2 = pneg %p3160_p0 }
  0x3a   : > { %2798 = dma.hbm_to_vmem [thread:$0]  (!%p3563_p6), %s4120_s6, 16, %s393_s24, [#allocation15]  }
  0x3b   : > { %p3168_p4 = pnand %p3167_p1, %p3161_p2 }
  0x3d   : > { %3171 = shalt.err (!%p3168_p4)
}
  0x3e   : > { %s3426_s0 = smov 64   ;;  %s3427_s23 = smov 4  }
  0x3f   : > { %s4121_s8 = sld [smem:[#allocation35_spill]]  ;;  %s3428_s24 = smov [#allocation13]  }
  0x40   : > { %s378_s26 = sshll.u32 %s3428_s24, 4  ;;  %s3429_s29 = smov [#allocation16]   ;;  %s379_s26 = int_to_ptr.vmem [resolvable:$true] %s378_s26 }
  0x41   : > { %s402_s20 = sshll.u32 %s3429_s29, 4  ;;  %s3183_s30 = scalar_lea.vmem %s379_s26, 256  ;;  %s403_s20 = int_to_ptr.vmem [resolvable:$true] %s402_s20 }
  0x42   : > { %p3184_p1 = scmp.ne.s32.totalorder %s379_s26, %s3183_s30  ;;  %p3191_p8 = scmp.lt.s32.totalorder %s379_s26, %s379_s26 }
  0x43   : > { %p3192_p9 = scmp.lt.s32.totalorder %s3183_s30, %s3183_s30 }
  0x44   : > { %p3186_p3 = pnand %p3184_p1, %p3569_p7 }
  0x45   : > { %2804 = dma.hbm_to_vmem [thread:$0]  (!%p3563_p6), %s4121_s8, 256, %s416_s27, [#allocation18], %s3426_s0, %s3426_s0, %s3427_s23  }
  0x46   : > { %p3187_p4 = pneg %p3186_p3  ;;  %p3193_p10 = por %p3192_p9, %p3191_p8 }
  0x48   : > { %p3194_p11 = pnand %p3193_p10, %p3187_p4 }
  0x4a   : > { %3197 = shalt.err (!%p3194_p11)
}
  0x4b   : > { %s4122_s5 = sld [smem:[#allocation32_spill]]  ;;  %s3209_s14 = scalar_lea.vmem %s403_s20, 256 }
  0x4c   : > { %p3210_p12 = scmp.ne.s32.totalorder %s403_s20, %s3209_s14  ;;  %p3217_p2 = scmp.lt.s32.totalorder %s403_s20, %s403_s20 }
  0x4d   : > { %p3218_p5 = scmp.lt.s32.totalorder %s3209_s14, %s3209_s14 }
  0x4e   : > { %p3212_p13 = pnand %p3210_p12, %p3569_p7 }
  0x4f   : > { %p3219_p1 = por %p3218_p5, %p3217_p2 }
  0x50   : > { %p3213_p0 = pneg %p3212_p13 }
  0x51   : > { %2795 = dma.hbm_to_vmem [thread:$0]  (!%p3563_p6), %s4122_s5, 256, %s379_s26, [#allocation12], %s3426_s0, %s3426_s0, %s3427_s23  }
  0x52   : > { %p3220_p3 = pnand %p3219_p1, %p3213_p0 }
  0x54   : > { %3223 = shalt.err (!%p3220_p3)
}
  0x55   : > { %s4123_s7 = sld [smem:[#allocation34_spill]]  ;;  %s3430_s26 = smov [#allocation19]  }
  0x56   : > { %s429_s29 = sshll.u32 %s3430_s26, 4  ;;  %s3431_s27 = smov [#allocation20]   ;;  %s430_s29 = int_to_ptr.vmem [resolvable:$true] %s429_s29 }
  0x57   : > { %s445_s3 = sshll.u32 %s3431_s27, 4  ;;  %s3235_s15 = scalar_lea.vmem %s430_s29, 16  ;;  %s446_s3 = int_to_ptr.vmem [resolvable:$true] %s445_s3 }
  0x58   : > { %p3236_p4 = scmp.ne.s32.totalorder %s430_s29, %s3235_s15  ;;  %s3242_s14 = scalar_lea.vmem %s430_s29, 32 }
  0x59   : > { %p3243_p10 = scmp.lt.s32.totalorder %s430_s29, %s430_s29  ;;  %p3244_p11 = scmp.lt.s32.totalorder %s3242_s14, %s3235_s15 }
  0x5a   : > { %p3238_p8 = pnand %p3236_p4, %p3569_p7 }
  0x5b   : > { %2801 = dma.hbm_to_vmem [thread:$0]  (!%p3563_p6), %s4123_s7, 256, %s403_s20, [#allocation15], %s3426_s0, %s3426_s0, %s3427_s23  }
  0x5c   : > { %p3239_p9 = pneg %p3238_p8  ;;  %p3245_p12 = por %p3244_p11, %p3243_p10 }
  0x5e   : > { %p3246_p13 = pnand %p3245_p12, %p3239_p9 }
  0x60   : > { %3249 = shalt.err (!%p3246_p13)
}
  0x61   : > { %2807 = dma.hbm_to_vmem [thread:$0]  (!%p3563_p6), %s4095_s9, 16, %s430_s29, [#allocation18]  }
  0x62   : > { %s3261_s24 = scalar_lea.vmem %s446_s3, 256  ;;  %p3269_p1 = scmp.lt.s32.totalorder %s446_s3, %s446_s3 }
  0x63   : > { %p3262_p0 = scmp.ne.s32.totalorder %s446_s3, %s3261_s24  ;;  %p3270_p3 = scmp.lt.s32.totalorder %s3261_s24, %s3261_s24 }
  0x65   : > { %p3264_p2 = pnand %p3262_p0, %p3569_p7  ;;  %p3271_p4 = por %p3270_p3, %p3269_p1 }
  0x67   : > { %p3265_p5 = pneg %p3264_p2 }
  0x69   : > { %p3272_p8 = pnand %p3271_p4, %p3265_p5 }
  0x6b   : > { %3275 = shalt.err (!%p3272_p8)
}
  0x6c   : > { %2810 = dma.hbm_to_vmem [thread:$0]  (!%p3563_p6), %s4098_s12, 256, %s446_s3, [#allocation21], %s3426_s0, %s3426_s0, %s3427_s23  }
  0x6d   : > { %s2391_s25 = sadd.s32 4294967294, %s3402_s19   ;;  %s3639_s28 = sadd.s32 1, %s3402_s19  }
  0x6e   : > { %s66_s29 = sadd.s32 1, %s3398_s18  ;;  %s63_s27 = ssub.s32 %s3402_s19, %s3639_s28 }
  0x6f   : > { %p73_p7 = scmp.ne.s32.totalorder %s3398_s18, %s3394_s17  ;;  %p64_p9 = scmp.eq.s32.totalorder %s63_s27, 0 }
  0x70   : > { %p74_p10 = scmp.eq.s32.totalorder %s3402_s19, 0  ;;  %p79_p11 = scmp.ne.s32.totalorder %s3394_s17, %s3390_s16 }
  0x71   : > { %p334_p12 = scmp.eq.s32.totalorder %s3549_s21, 7  ;;  %p4124_p0 = scmp.eq.s32.totalorder %s3549_s21, 0 }
  0x72   : > { %s3651_s14 = scalar_select %p64_p9, %s3398_s18, %s66_s29  }
  0x73   : > { %p75_p13 = por %p74_p10, %p73_p7  ;;  %p3655_p2 = por %p4124_p0, %p79_p11 }
  0x74   : > { %p3659_p6 = por %p334_p12, %p73_p7  ;;  %p340_p5 = scmp.eq.s32.totalorder %s2391_s25, 7 }
  0x75   : > { %s4125_s30 = scalar_select %p3655_p2, 1, 0 }
  0x76   : > { %s4126_s0 = scalar_select %p3659_p6, 1, 0 }
  0x77   : > { %p2826_p1 = scmp.lt.s32.totalorder %s3402_s19, 8  ;;  %s462_s23 = sand.u32 1, %s3398_s18  }
  0x78   : > { %p3665_p3 = por %p340_p5, %p79_p11  ;;  %s2401_s20 = sshll.u32 %s462_s23, 4 }
  0x79   : > { %s2506_s24 = sshll.u32 %s3402_s19, 8  ;;  %s466_s27 = scalar_lea.vmem [#allocation8], %s2401_s20 }
  0x7a   : > { %s4127_s3 = scalar_select %p3665_p3, 1, 0 }
  0x7b   : > { %s3673_s29 = scalar_lea.hbm %s4088_s2, %s2506_s24  ;;  %s473_s4 = sshll.u32 %s466_s27, 4  ;;  %s3679_s4 = int_to_ptr.vmem [resolvable:$true] %s473_s4 }
  0x7c   : > { %p3675_p4 = pnand %p2826_p1, %p75_p13  ;;  %s3681_s5 = scalar_lea.sflag [#allocation9], %s462_s23 }
  0x7d   : > { %s3276_s6 = scalar_lea.hbm %s3673_s29, 256  ;;  %s3281_s20 = scalar_lea.hbm %s4088_s2, 2048 }
  0x7e   : > { %p3277_p8 = scmp.ne.s32.totalorder %s3673_s29, %s3276_s6  ;;  %p3278_p7 = pneg %p3675_p4 }
  0x7f   : > { %p3282_p11 = scmp.lt.s32.totalorder %s3673_s29, %s4088_s2  ;;  %p3283_p12 = scmp.lt.s32.totalorder %s3281_s20, %s3276_s6 }
  0x80   : > { %p3279_p9 = pnand %p3278_p7, %p3277_p8 }
  0x81   : > { %p3284_p13 = por %p3283_p12, %p3282_p11 }
  0x82   : > { %p3280_p10 = pneg %p3279_p9 }
  0x84   : > { %p3285_p0 = pnand %p3284_p13, %p3280_p10 }
  0x86   : > { %3288 = shalt.err (!%p3285_p0)
}
  0x87   : > { %s3289_s23 = scalar_lea.vmem %s3679_s4, 256  ;;  %s3432_s7 = smov [#allocation8]  }
  0x88   : > { %p3290_p5 = scmp.ne.s32.totalorder %s3679_s4, %s3289_s23  ;;  %s3294_s8 = sshll.u32 %s3432_s7, 4  ;;  %s3295_s8 = int_to_ptr.vmem [resolvable:$false] %s3294_s8 }
  0x89   : > { %s3296_s24 = scalar_lea.vmem %s3295_s8, 512  ;;  %p3297_p9 = scmp.lt.s32.totalorder %s3679_s4, %s3295_s8 }
  0x8a   : > { %p3292_p1 = pnand %p3290_p5, %p3278_p7  ;;  %p3298_p3 = scmp.lt.s32.totalorder %s3296_s24, %s3289_s23 }
  0x8c   : > { %p3293_p8 = pneg %p3292_p1  ;;  %p3299_p6 = por %p3298_p3, %p3297_p9 }
  0x8e   : > { %p3300_p2 = pnand %p3299_p6, %p3293_p8 }
  0x90   : > { %3303 = shalt.err (!%p3300_p2)
}
  0x91   : > { %s4129_s6 = smov 8   ;;  %s4130_s15 = smov 128  }
  0x92   : > { %2814 = dma.hbm_to_vmem [thread:$0]  (!%p3675_p4), %s3673_s29, 256, %s3679_s4, %s3681_s5, %s4130_s15, %s4130_s15, %s4129_s6  }
  0x93   : > { %p4131_p7 = scmp.ne.s32.totalorder %s4116_s22, 0 }
  0x94   : > { %s3708_s7 = sand.u32 (!%p4131_p7), 1, %s3394_s17   ;;  %p4132_p2 = scmp.ne.s32.totalorder (!%p4131_p7), %s4125_s30, 0 }
  0x95   : > { %485 = sbr.rel (%p4131_p7) target bundleno = 8689 (0x21f1), region = 72  ;;  %s2405_s8 = sshll.u32 (!%p4131_p7), %s3708_s7, 4 }
  0x96   : > { %s488_s20 = scalar_lea.sflag (!%p4131_p7), [#allocation9], %s3708_s7  ;;  %s3712_s26 = scalar_lea.vmem (!%p4131_p7), [#allocation8], %s2405_s8 }
  0x9a   : > { %3365 = dma.done.wait (%p4132_p2), %s488_s20, 256  }
  0x9b   : > { %3367 = vsyncadd (%p4132_p2), %s488_s20, 4294967040  ;;  %p4133_p6 = scmp.eq.s32.totalorder %s3549_s21, 0 }
  0x9d   : > { %3369 = dma.done.wait (%p4133_p6), [#allocation12], 768   ;;  %p4134_p3 = pmov %p4133_p6 }
  0x9f   : > { %3371 = vsyncadd (%p4134_p3), [#allocation12], 4294966528  ;;  %p4135_p4 = pmov %p4134_p3 }
  0xa0   : > { %p4136_p10 = pmov %p4134_p3 }
  0xa1   : > { %3373 = dma.done.wait (%p4135_p4), [#allocation15], 272  }
  0xa2   : > { %3375 = vsyncadd (%p4136_p10), [#allocation15], 4294967024  ;;  %p4137_p11 = pmov %p4134_p3 }
  0xa3   : > { %p4138_p12 = pmov %p4134_p3 }
  0xa4   : > { %3377 = dma.done.wait (%p4137_p11), [#allocation18], 272  }
  0xa5   : > { %3379 = vsyncadd (%p4138_p12), [#allocation18], 4294967024  ;;  %p4139_p13 = pmov %p4134_p3 }
  0xa6   : > { %p4140_p0 = pmov %p4134_p3 }
  0xa7   : > { %3381 = dma.done.wait (%p4139_p13), [#allocation21], 256  }
  0xa8   : > { %3383 = vsyncadd (%p4140_p0), [#allocation21], 4294967040  ;;  %s3734_s4 = scalar_lea.vmem [#allocation22], %s2405_s8  ;;  %p4141_p5 = scmp.ne.s32.totalorder %s3549_s21, 0 }
  0xa9   : > { %s3436_s5 = smov (!%p4141_p5), 64   ;;  %s3437_s29 = smov (!%p4141_p5), 96  }
  0xaa   : > { %566 = sbr.rel (%p4141_p5) target bundleno = 7214 (0x1c2e), region = 108 }
  0xaf   : > { %v3738_v0 = vld [vmem:[#allocation13 + $0x8] sm:$0xff]   ;;  %v3433_v1 = vmov 0.0   ;;  %v3747_v2 = vld [vmem:[#allocation13] sm:$0xff]   ;;  %vm3434_vm0 = vmmov 0   ;;  %v3435_v3 = vmov 0   ;;  %v2509_v11 = vld [vmem:[%s4087_s1] sm:$0xff]  }
  0xb0   : > { %2608 = vmatprep.subr.bf16.mxu0 %v3433_v1  ;;  %1795 = vst [vmem:[%s3734_s4] sm:$0xff] %v3433_v1  ;;  %1796 = vst [vmem:[%s3734_s4 + $0x8] sm:$0xff] %v3433_v1  ;;  %2616 = vmatprep.subr.bf16.mxu1 %v3433_v1  ;;  %v3766_v4 = vld [vmem:[#allocation14] ss:$0 sm:$0xff]  ;;  %v2510_v12 = vunpack.c.l.bf16 %v2509_v11  ;;  %v2511_v14 = vunpack.c.h.bf16 %v2509_v11  ;;  %vm594_vm1 = vcmask 261120   ;;  %v2548_v52 = vld [vmem:[%s4087_s1 + $0x8] sm:$0xff]  }
  0xb1   : > { %2609 = vmatpush3.bf16.msra.mxu0 %v3738_v0  ;;  %2612 = vmatprep.mubr.msk.bf16.mxu0 %vm3434_vm0, %v3433_v1  ;;  %v2514_v53 = vunpack.c.l.bf16 %v2548_v52  ;;  %v2515_v55 = vunpack.c.h.bf16 %v2548_v52 }
  0xb2   : > { %2610 = vmatprep.subr.bf16.mxu0 %v3433_v1  ;;  %2617 = vmatpush3.bf16.msra.mxu1 %v3738_v0 }
  0xb3   : > { %2618 = vmatprep.subr.bf16.mxu1 %v3433_v1  ;;  %2620 = vmatprep.mubr.msk.bf16.mxu1 %vm3434_vm0, %v3433_v1 }
  0xb5   : > { %2611 = vmatpush3.bf16.msra.mxu0 %v3747_v2 }
  0xb6   : > { %2619 = vmatpush3.bf16.msra.mxu1 %v3747_v2  ;;  %2624 = vmatprep.subr.bf16.mxu0 %v3433_v1 }
  0xb7   : > { %2632 = vmatprep.subr.bf16.mxu1 %v3433_v1 }
  0xb8   : > { %2613 = vmatmul.mubr.bf16.vlgmr.msra.gmra.mxu0 %v3435_v3 }
  0xb9   : > { %2625 = vmatpush3.bf16.msra.mxu0 %v3738_v0  ;;  %2628 = vmatprep.mubr.msk.bf16.mxu0 %vm3434_vm0, %v3433_v1 }
  0xba   : > { %2626 = vmatprep.subr.bf16.mxu0 %v3433_v1 }
  0xbd   : > { %2627 = vmatpush3.bf16.msra.mxu0 %v3747_v2 }
  0xbe   : > { %2640 = vmatprep.subr.bf16.mxu0 %v3433_v1 }
 0x178   : > { %v632_v5 = vpop.f32.mrf.mxu0 }
 0x179   : > { %v633_v6 = vadd.f32 %v3766_v4, %v632_v5 }
 0x17a   : > { %v2614_v7 = vpop.f32.mrf.mxu0 }
 0x17b   : > { %655 = vrot.lane.b32.xlu0 %v633_v6, %s3436_s5  ;;  %v639_v13 = vadd.f32 %v2510_v12, %v633_v6 }
 0x17c   : > { %v635_v8 = vpop.f32.mrf.mxu0 }
 0x17d   : > { %v636_v9 = vadd.f32 %v3766_v4, %v635_v8  ;;  %v2418_v15 = vmul.f32 -1.442695, %v639_v13 }
 0x17e   : > { %v2615_v10 = vpop.f32.mrf.mxu0 }
 0x17f   : > { %657 = vrot.lane.b32.xlu0 %v636_v9, %s3436_s5  ;;  %v640_v16 = vadd.f32 %v2511_v14, %v636_v9  ;;  %2934 = vpow2.f32 %v2418_v15 }
 0x181   : > { %v2419_v17 = vmul.f32 -1.442695, %v640_v16 }
 0x183   : > { %2936 = vpow2.f32 %v2419_v17 }
 0x18c   : > { %v2935_v18 = vpop.eup %2934 }
 0x18d   : > { %v647_v19 = vadd.f32 1.0, %v2935_v18 }
 0x18f   : > { %2938 = vrcp.f32 %v647_v19 }
 0x190   : > { %v2937_v20 = vpop.eup %2936 }
 0x191   : > { %v648_v21 = vadd.f32 1.0, %v2937_v20 }
 0x193   : > { %2940 = vrcp.f32 %v648_v21 }
 0x19c   : > { %v2939_v22 = vpop.eup %2938 }
 0x19d   : > { %v675_v35 = vsub.f32 1.0, %v2939_v22  ;;  %v687_v39 = vmul.f32 0.0, %v2939_v22 }
 0x1a0   : > { %v2941_v25 = vpop.eup %2940 }
 0x1a1   : > { %v676_v37 = vsub.f32 1.0, %v2941_v25  ;;  %v688_v40 = vmul.f32 0.0, %v2941_v25 }
 0x1ed   : > { %v656_v23 = vpop.permute.xlu0 %655 }
 0x1ee   : > { %v661_v24 = vmul.f32 %v2939_v22, %v656_v23 }
 0x1f0   : > { %665 = vrot.lane.b32.xlu1 %v661_v24, %s3436_s5 }
 0x1f1   : > { %v658_v26 = vpop.permute.xlu0 %657 }
 0x1f2   : > { %v662_v27 = vmul.f32 %v2941_v25, %v658_v26 }
 0x1f4   : > { %667 = vrot.lane.b32.xlu1 %v662_v27, %s3436_s5 }
 0x262   : > { %v666_v28 = vpop.permute.xlu1 %665 }
 0x263   : > { %v671_v29 = vadd.f32 %v2510_v12, %v666_v28 }
 0x265   : > { %2942 = vtanh.f32 %v671_v29 }
 0x266   : > { %v668_v30 = vpop.permute.xlu1 %667 }
 0x267   : > { %v672_v31 = vadd.f32 %v2511_v14, %v668_v30 }
 0x269   : > { %2944 = vtanh.f32 %v672_v31 }
 0x272   : > { %v2943_v32 = vpop.eup %2942 }
 0x273   : > { %679 = vrot.lane.b32.xlu0 %v2943_v32, %s3437_s29 }
 0x276   : > { %v2945_v33 = vpop.eup %2944 }
 0x277   : > { %681 = vrot.lane.b32.xlu1 %v2945_v33, %s3437_s29  ;;  %v2549_v33 = vld [vmem:[%s4087_s1 + $0x10] sm:$0xff]  }
 0x2e5   : > { %v680_v34 = vpop.permute.xlu0 %679 }
 0x2e6   : > { %v685_v36 = vmul.f32 %v680_v34, %v675_v35  ;;  %v2518_v34 = vunpack.c.l.bf16 %v2549_v33 }
 0x2e8   : > { %v689_v42 = vadd.f32 %v687_v39, %v685_v36  ;;  %v2519_v36 = vunpack.c.h.bf16 %v2549_v33 }
 0x2e9   : > { %v682_v38 = vpop.permute.xlu1 %681 }
 0x2ea   : > { %v686_v41 = vmul.f32 %v682_v38, %v676_v37 }
 0x2ec   : > { %v690_v43 = vadd.f32 %v688_v40, %v686_v41 }
 0x2ee   : > { %v696_v44 = vpack.c.bf16 %v690_v43, %v689_v42 }
 0x2f0   : > { %698 = vrot.lane.b32.xlu0 %v696_v44, %s3437_s29 }
 0x362   : > { %v699_v45 = vpop.permute.xlu0 %698 }
 0x363   : > { %2621 = vmatmul.mubr.msk.bf16.vlgmr.msra.gmra.mxu1 %vm594_vm1, %v699_v45 }
 0x364   : > { %2633 = vmatpush3.bf16.msra.mxu1 %v3738_v0  ;;  %2636 = vmatprep.mubr.msk.bf16.mxu1 %vm3434_vm0, %v3433_v1 }
 0x365   : > { %2634 = vmatprep.subr.bf16.mxu1 %v3433_v1 }
 0x368   : > { %2635 = vmatpush3.bf16.msra.mxu1 %v3747_v2 }
 0x369   : > { %2648 = vmatprep.subr.bf16.mxu1 %v3433_v1 }
 0x423   : > { %v737_v46 = vpop.f32.mrf.mxu1 }
 0x424   : > { %v738_v47 = vadd.f32 %v3766_v4, %v737_v46 }
 0x425   : > { %v2622_v48 = vpop.f32.mrf.mxu1 }
 0x426   : > { %760 = vrot.lane.b32.xlu1 %v738_v47, %s3436_s5  ;;  %v744_v54 = vadd.f32 %v2514_v53, %v738_v47 }
 0x427   : > { %v740_v49 = vpop.f32.mrf.mxu1 }
 0x428   : > { %v741_v50 = vadd.f32 %v3766_v4, %v740_v49  ;;  %v2423_v56 = vmul.f32 -1.442695, %v744_v54 }
 0x429   : > { %v2623_v51 = vpop.f32.mrf.mxu1 }
 0x42a   : > { %762 = vrot.lane.b32.xlu0 %v741_v50, %s3436_s5  ;;  %v745_v57 = vadd.f32 %v2515_v55, %v741_v50  ;;  %2946 = vpow2.f32 %v2423_v56 }
 0x42c   : > { %v2424_v58 = vmul.f32 -1.442695, %v745_v57 }
 0x42e   : > { %2948 = vpow2.f32 %v2424_v58 }
 0x437   : > { %v2947_v59 = vpop.eup %2946 }
 0x438   : > { %v752_v60 = vadd.f32 1.0, %v2947_v59 }
 0x43a   : > { %2950 = vrcp.f32 %v752_v60 }
 0x43b   : > { %v2949_v61 = vpop.eup %2948 }
 0x43c   : > { %v753_v62 = vadd.f32 1.0, %v2949_v61 }
 0x43e   : > { %2952 = vrcp.f32 %v753_v62 }
 0x447   : > { %v2951_v63 = vpop.eup %2950 }
 0x448   : > { %v780_v16 = vsub.f32 1.0, %v2951_v63  ;;  %v792_v20 = vmul.f32 %v2951_v63, %v689_v42 }
 0x44b   : > { %v2953_v6 = vpop.eup %2952 }
 0x44c   : > { %v781_v18 = vsub.f32 1.0, %v2953_v6  ;;  %v793_v21 = vmul.f32 %v2953_v6, %v690_v43 }
 0x498   : > { %v761_v3 = vpop.permute.xlu1 %760 }
 0x499   : > { %v766_v5 = vmul.f32 %v2951_v63, %v761_v3 }
 0x49b   : > { %770 = vrot.lane.b32.xlu1 %v766_v5, %s3436_s5 }
 0x49c   : > { %v763_v7 = vpop.permute.xlu0 %762 }
 0x49d   : > { %v767_v8 = vmul.f32 %v2953_v6, %v763_v7 }
 0x49f   : > { %772 = vrot.lane.b32.xlu0 %v767_v8, %s3436_s5 }
 0x50d   : > { %v771_v9 = vpop.permute.xlu1 %770 }
 0x50e   : > { %v776_v10 = vadd.f32 %v2514_v53, %v771_v9 }
 0x510   : > { %2954 = vtanh.f32 %v776_v10 }
 0x511   : > { %v773_v11 = vpop.permute.xlu0 %772 }
 0x512   : > { %v777_v12 = vadd.f32 %v2515_v55, %v773_v11 }
 0x514   : > { %2956 = vtanh.f32 %v777_v12 }
 0x51d   : > { %v2955_v13 = vpop.eup %2954 }
 0x51e   : > { %784 = vrot.lane.b32.xlu1 %v2955_v13, %s3437_s29 }
 0x521   : > { %v2957_v14 = vpop.eup %2956 }
 0x522   : > { %786 = vrot.lane.b32.xlu0 %v2957_v14, %s3437_s29  ;;  %v2550_v14 = vld [vmem:[%s4087_s1 + $0x18] sm:$0xff]  }
 0x590   : > { %v785_v15 = vpop.permute.xlu1 %784 }
 0x591   : > { %v790_v17 = vmul.f32 %v785_v15, %v780_v16  ;;  %v2522_v15 = vunpack.c.l.bf16 %v2550_v14 }
 0x593   : > { %v794_v23 = vadd.f32 %v792_v20, %v790_v17  ;;  %v2523_v17 = vunpack.c.h.bf16 %v2550_v14 }
 0x594   : > { %v787_v19 = vpop.permute.xlu0 %786 }
 0x595   : > { %v791_v22 = vmul.f32 %v787_v19, %v781_v18 }
 0x597   : > { %v795_v24 = vadd.f32 %v793_v21, %v791_v22 }
 0x599   : > { %v801_v25 = vpack.c.bf16 %v795_v24, %v794_v23 }
 0x59b   : > { %803 = vrot.lane.b32.xlu1 %v801_v25, %s3437_s29 }
 0x60d   : > { %v804_v26 = vpop.permute.xlu1 %803 }
 0x60e   : > { %2629 = vmatmul.mubr.msk.bf16.vlgmr.msra.gmra.mxu0 %vm594_vm1, %v804_v26 }
 0x60f   : > { %2641 = vmatpush3.bf16.msra.mxu0 %v3738_v0  ;;  %2644 = vmatprep.mubr.msk.bf16.mxu0 %vm3434_vm0, %v3433_v1 }
 0x610   : > { %2642 = vmatprep.subr.bf16.mxu0 %v3433_v1 }
 0x613   : > { %2643 = vmatpush3.bf16.msra.mxu0 %v3747_v2 }
 0x614   : > { %2656 = vmatprep.subr.bf16.mxu0 %v3433_v1 }
 0x6ce   : > { %v842_v27 = vpop.f32.mrf.mxu0 }
 0x6cf   : > { %v843_v28 = vadd.f32 %v3766_v4, %v842_v27 }
 0x6d0   : > { %v2630_v29 = vpop.f32.mrf.mxu0 }
 0x6d1   : > { %865 = vrot.lane.b32.xlu0 %v843_v28, %s3436_s5  ;;  %v849_v35 = vadd.f32 %v2518_v34, %v843_v28 }
 0x6d2   : > { %v845_v30 = vpop.f32.mrf.mxu0 }
 0x6d3   : > { %v846_v31 = vadd.f32 %v3766_v4, %v845_v30  ;;  %v2428_v37 = vmul.f32 -1.442695, %v849_v35 }
 0x6d4   : > { %v2631_v32 = vpop.f32.mrf.mxu0 }
 0x6d5   : > { %867 = vrot.lane.b32.xlu1 %v846_v31, %s3436_s5  ;;  %v850_v38 = vadd.f32 %v2519_v36, %v846_v31  ;;  %2958 = vpow2.f32 %v2428_v37 }
 0x6d7   : > { %v2429_v39 = vmul.f32 -1.442695, %v850_v38 }
 0x6d9   : > { %2960 = vpow2.f32 %v2429_v39 }
 0x6e2   : > { %v2959_v40 = vpop.eup %2958 }
 0x6e3   : > { %v857_v41 = vadd.f32 1.0, %v2959_v40 }
 0x6e5   : > { %2962 = vrcp.f32 %v857_v41 }
 0x6e6   : > { %v2961_v42 = vpop.eup %2960 }
 0x6e7   : > { %v858_v43 = vadd.f32 1.0, %v2961_v42 }
 0x6e9   : > { %2964 = vrcp.f32 %v858_v43 }
 0x6f2   : > { %v2963_v44 = vpop.eup %2962 }
 0x6f3   : > { %v885_v57 = vsub.f32 1.0, %v2963_v44  ;;  %v897_v61 = vmul.f32 %v2963_v44, %v794_v23 }
 0x6f6   : > { %v2965_v47 = vpop.eup %2964 }
 0x6f7   : > { %v886_v59 = vsub.f32 1.0, %v2965_v47  ;;  %v898_v62 = vmul.f32 %v2965_v47, %v795_v24 }
 0x743   : > { %v866_v45 = vpop.permute.xlu0 %865 }
 0x744   : > { %v871_v46 = vmul.f32 %v2963_v44, %v866_v45 }
 0x746   : > { %875 = vrot.lane.b32.xlu0 %v871_v46, %s3436_s5 }
 0x747   : > { %v868_v48 = vpop.permute.xlu1 %867 }
 0x748   : > { %v872_v49 = vmul.f32 %v2965_v47, %v868_v48 }
 0x74a   : > { %877 = vrot.lane.b32.xlu1 %v872_v49, %s3436_s5 }
 0x7b8   : > { %v876_v50 = vpop.permute.xlu0 %875 }
 0x7b9   : > { %v881_v51 = vadd.f32 %v2518_v34, %v876_v50 }
 0x7bb   : > { %2966 = vtanh.f32 %v881_v51 }
 0x7bc   : > { %v878_v52 = vpop.permute.xlu1 %877 }
 0x7bd   : > { %v882_v53 = vadd.f32 %v2519_v36, %v878_v52 }
 0x7bf   : > { %2968 = vtanh.f32 %v882_v53 }
 0x7c8   : > { %v2967_v54 = vpop.eup %2966 }
 0x7c9   : > { %889 = vrot.lane.b32.xlu0 %v2967_v54, %s3437_s29 }
 0x7cc   : > { %v2969_v55 = vpop.eup %2968 }
 0x7cd   : > { %891 = vrot.lane.b32.xlu1 %v2969_v55, %s3437_s29  ;;  %v2551_v55 = vld [vmem:[%s4087_s1 + $0x20] sm:$0xff]  }
 0x83b   : > { %v890_v56 = vpop.permute.xlu0 %889 }
 0x83c   : > { %v895_v58 = vmul.f32 %v890_v56, %v885_v57  ;;  %v2526_v56 = vunpack.c.l.bf16 %v2551_v55 }
 0x83e   : > { %v899_v3 = vadd.f32 %v897_v61, %v895_v58  ;;  %v2527_v58 = vunpack.c.h.bf16 %v2551_v55 }
 0x83f   : > { %v892_v60 = vpop.permute.xlu1 %891 }
 0x840   : > { %v896_v63 = vmul.f32 %v892_v60, %v886_v59 }
 0x842   : > { %v900_v5 = vadd.f32 %v898_v62, %v896_v63 }
 0x844   : > { %v906_v6 = vpack.c.bf16 %v900_v5, %v899_v3 }
 0x846   : > { %908 = vrot.lane.b32.xlu0 %v906_v6, %s3437_s29 }
 0x8b8   : > { %v909_v7 = vpop.permute.xlu0 %908 }
 0x8b9   : > { %2637 = vmatmul.mubr.msk.bf16.vlgmr.msra.gmra.mxu1 %vm594_vm1, %v909_v7 }
 0x8ba   : > { %2649 = vmatpush3.bf16.msra.mxu1 %v3738_v0  ;;  %2652 = vmatprep.mubr.msk.bf16.mxu1 %vm3434_vm0, %v3433_v1 }
 0x8bb   : > { %2650 = vmatprep.subr.bf16.mxu1 %v3433_v1 }
 0x8be   : > { %2651 = vmatpush3.bf16.msra.mxu1 %v3747_v2 }
 0x8bf   : > { %2664 = vmatprep.subr.bf16.mxu1 %v3433_v1 }
 0x979   : > { %v947_v8 = vpop.f32.mrf.mxu1 }
 0x97a   : > { %v948_v9 = vadd.f32 %v3766_v4, %v947_v8 }
 0x97b   : > { %v2638_v10 = vpop.f32.mrf.mxu1 }
 0x97c   : > { %970 = vrot.lane.b32.xlu1 %v948_v9, %s3436_s5  ;;  %v954_v16 = vadd.f32 %v2522_v15, %v948_v9 }
 0x97d   : > { %v950_v11 = vpop.f32.mrf.mxu1 }
 0x97e   : > { %v951_v12 = vadd.f32 %v3766_v4, %v950_v11  ;;  %v2433_v18 = vmul.f32 -1.442695, %v954_v16 }
 0x97f   : > { %v2639_v13 = vpop.f32.mrf.mxu1 }
 0x980   : > { %972 = vrot.lane.b32.xlu0 %v951_v12, %s3436_s5  ;;  %v955_v19 = vadd.f32 %v2523_v17, %v951_v12  ;;  %2970 = vpow2.f32 %v2433_v18 }
 0x982   : > { %v2434_v20 = vmul.f32 -1.442695, %v955_v19 }
 0x984   : > { %2972 = vpow2.f32 %v2434_v20 }
 0x98d   : > { %v2971_v21 = vpop.eup %2970 }
 0x98e   : > { %v962_v22 = vadd.f32 1.0, %v2971_v21 }
 0x990   : > { %2974 = vrcp.f32 %v962_v22 }
 0x991   : > { %v2973_v23 = vpop.eup %2972 }
 0x992   : > { %v963_v24 = vadd.f32 1.0, %v2973_v23 }
 0x994   : > { %2976 = vrcp.f32 %v963_v24 }
 0x99d   : > { %v2975_v25 = vpop.eup %2974 }
 0x99e   : > { %v990_v38 = vsub.f32 1.0, %v2975_v25  ;;  %v1002_v42 = vmul.f32 %v2975_v25, %v899_v3 }
 0x9a1   : > { %v2977_v28 = vpop.eup %2976 }
 0x9a2   : > { %v991_v40 = vsub.f32 1.0, %v2977_v28  ;;  %v1003_v43 = vmul.f32 %v2977_v28, %v900_v5 }
 0x9ee   : > { %v971_v26 = vpop.permute.xlu1 %970 }
 0x9ef   : > { %v976_v27 = vmul.f32 %v2975_v25, %v971_v26 }
 0x9f1   : > { %980 = vrot.lane.b32.xlu1 %v976_v27, %s3436_s5 }
 0x9f2   : > { %v973_v29 = vpop.permute.xlu0 %972 }
 0x9f3   : > { %v977_v30 = vmul.f32 %v2977_v28, %v973_v29 }
 0x9f5   : > { %982 = vrot.lane.b32.xlu0 %v977_v30, %s3436_s5 }
 0xa63   : > { %v981_v31 = vpop.permute.xlu1 %980 }
 0xa64   : > { %v986_v32 = vadd.f32 %v2522_v15, %v981_v31 }
 0xa66   : > { %2978 = vtanh.f32 %v986_v32 }
 0xa67   : > { %v983_v33 = vpop.permute.xlu0 %982 }
 0xa68   : > { %v987_v34 = vadd.f32 %v2523_v17, %v983_v33 }
 0xa6a   : > { %2980 = vtanh.f32 %v987_v34 }
 0xa73   : > { %v2979_v35 = vpop.eup %2978 }
 0xa74   : > { %994 = vrot.lane.b32.xlu1 %v2979_v35, %s3437_s29 }
 0xa77   : > { %v2981_v36 = vpop.eup %2980 }
 0xa78   : > { %996 = vrot.lane.b32.xlu0 %v2981_v36, %s3437_s29  ;;  %v2552_v36 = vld [vmem:[%s4087_s1 + $0x28] sm:$0xff]  }
 0xae6   : > { %v995_v37 = vpop.permute.xlu1 %994 }
 0xae7   : > { %v1000_v39 = vmul.f32 %v995_v37, %v990_v38  ;;  %v2530_v37 = vunpack.c.l.bf16 %v2552_v36 }
 0xae9   : > { %v1004_v45 = vadd.f32 %v1002_v42, %v1000_v39  ;;  %v2531_v39 = vunpack.c.h.bf16 %v2552_v36 }
 0xaea   : > { %v997_v41 = vpop.permute.xlu0 %996 }
 0xaeb   : > { %v1001_v44 = vmul.f32 %v997_v41, %v991_v40 }
 0xaed   : > { %v1005_v46 = vadd.f32 %v1003_v43, %v1001_v44 }
 0xaef   : > { %v1011_v47 = vpack.c.bf16 %v1005_v46, %v1004_v45 }
 0xaf1   : > { %1013 = vrot.lane.b32.xlu1 %v1011_v47, %s3437_s29 }
 0xb63   : > { %v1014_v48 = vpop.permute.xlu1 %1013 }
 0xb64   : > { %2645 = vmatmul.mubr.msk.bf16.vlgmr.msra.gmra.mxu0 %vm594_vm1, %v1014_v48 }
 0xb65   : > { %2657 = vmatpush3.bf16.msra.mxu0 %v3738_v0  ;;  %2660 = vmatprep.mubr.msk.bf16.mxu0 %vm3434_vm0, %v3433_v1 }
 0xb66   : > { %2658 = vmatprep.subr.bf16.mxu0 %v3433_v1 }
 0xb69   : > { %2659 = vmatpush3.bf16.msra.mxu0 %v3747_v2 }
 0xb6a   : > { %2672 = vmatprep.subr.bf16.mxu0 %v3433_v1 }
 0xc24   : > { %v1052_v49 = vpop.f32.mrf.mxu0 }
 0xc25   : > { %v1053_v50 = vadd.f32 %v3766_v4, %v1052_v49 }
 0xc26   : > { %v2646_v51 = vpop.f32.mrf.mxu0 }
 0xc27   : > { %1075 = vrot.lane.b32.xlu0 %v1053_v50, %s3436_s5  ;;  %v1059_v57 = vadd.f32 %v2526_v56, %v1053_v50 }
 0xc28   : > { %v1055_v52 = vpop.f32.mrf.mxu0 }
 0xc29   : > { %v1056_v53 = vadd.f32 %v3766_v4, %v1055_v52  ;;  %v2438_v59 = vmul.f32 -1.442695, %v1059_v57 }
 0xc2a   : > { %v2647_v54 = vpop.f32.mrf.mxu0 }
 0xc2b   : > { %1077 = vrot.lane.b32.xlu1 %v1056_v53, %s3436_s5  ;;  %v1060_v60 = vadd.f32 %v2527_v58, %v1056_v53  ;;  %2982 = vpow2.f32 %v2438_v59 }
 0xc2d   : > { %v2439_v61 = vmul.f32 -1.442695, %v1060_v60 }
 0xc2f   : > { %2984 = vpow2.f32 %v2439_v61 }
 0xc38   : > { %v2983_v62 = vpop.eup %2982 }
 0xc39   : > { %v1067_v63 = vadd.f32 1.0, %v2983_v62 }
 0xc3b   : > { %2986 = vrcp.f32 %v1067_v63 }
 0xc3c   : > { %v2985_v3 = vpop.eup %2984 }
 0xc3d   : > { %v1068_v5 = vadd.f32 1.0, %v2985_v3 }
 0xc3f   : > { %2988 = vrcp.f32 %v1068_v5 }
 0xc48   : > { %v2987_v6 = vpop.eup %2986 }
 0xc49   : > { %v1095_v19 = vsub.f32 1.0, %v2987_v6  ;;  %v1107_v23 = vmul.f32 %v2987_v6, %v1004_v45 }
 0xc4c   : > { %v2989_v9 = vpop.eup %2988 }
 0xc4d   : > { %v1096_v21 = vsub.f32 1.0, %v2989_v9  ;;  %v1108_v24 = vmul.f32 %v2989_v9, %v1005_v46 }
 0xc99   : > { %v1076_v7 = vpop.permute.xlu0 %1075 }
 0xc9a   : > { %v1081_v8 = vmul.f32 %v2987_v6, %v1076_v7 }
 0xc9c   : > { %1085 = vrot.lane.b32.xlu0 %v1081_v8, %s3436_s5 }
 0xc9d   : > { %v1078_v10 = vpop.permute.xlu1 %1077 }
 0xc9e   : > { %v1082_v11 = vmul.f32 %v2989_v9, %v1078_v10 }
 0xca0   : > { %1087 = vrot.lane.b32.xlu1 %v1082_v11, %s3436_s5 }
 0xd0e   : > { %v1086_v12 = vpop.permute.xlu0 %1085 }
 0xd0f   : > { %v1091_v13 = vadd.f32 %v2526_v56, %v1086_v12 }
 0xd11   : > { %2990 = vtanh.f32 %v1091_v13 }
 0xd12   : > { %v1088_v14 = vpop.permute.xlu1 %1087 }
 0xd13   : > { %v1092_v15 = vadd.f32 %v2527_v58, %v1088_v14 }
 0xd15   : > { %2992 = vtanh.f32 %v1092_v15 }
 0xd1e   : > { %v2991_v16 = vpop.eup %2990 }
 0xd1f   : > { %1099 = vrot.lane.b32.xlu0 %v2991_v16, %s3437_s29 }
 0xd22   : > { %v2993_v17 = vpop.eup %2992 }
 0xd23   : > { %1101 = vrot.lane.b32.xlu1 %v2993_v17, %s3437_s29  ;;  %v2553_v17 = vld [vmem:[%s4087_s1 + $0x30] sm:$0xff]  }
 0xd91   : > { %v1100_v18 = vpop.permute.xlu0 %1099 }
 0xd92   : > { %v1105_v20 = vmul.f32 %v1100_v18, %v1095_v19  ;;  %v2534_v18 = vunpack.c.l.bf16 %v2553_v17 }
 0xd94   : > { %v1109_v26 = vadd.f32 %v1107_v23, %v1105_v20  ;;  %v2535_v20 = vunpack.c.h.bf16 %v2553_v17 }
 0xd95   : > { %v1102_v22 = vpop.permute.xlu1 %1101 }
 0xd96   : > { %v1106_v25 = vmul.f32 %v1102_v22, %v1096_v21 }
 0xd98   : > { %v1110_v27 = vadd.f32 %v1108_v24, %v1106_v25 }
 0xd9a   : > { %v1116_v28 = vpack.c.bf16 %v1110_v27, %v1109_v26 }
 0xd9c   : > { %1118 = vrot.lane.b32.xlu0 %v1116_v28, %s3437_s29 }
 0xe0e   : > { %v1119_v29 = vpop.permute.xlu0 %1118 }
 0xe0f   : > { %2653 = vmatmul.mubr.msk.bf16.vlgmr.msra.gmra.mxu1 %vm594_vm1, %v1119_v29 }
 0xe10   : > { %2665 = vmatpush3.bf16.msra.mxu1 %v3738_v0  ;;  %2668 = vmatprep.mubr.msk.bf16.mxu1 %vm3434_vm0, %v3433_v1 }
 0xe11   : > { %2666 = vmatprep.subr.bf16.mxu1 %v3433_v1 }
 0xe14   : > { %2667 = vmatpush3.bf16.msra.mxu1 %v3747_v2 }
 0xe15   : > { %2680 = vmatprep.subr.bf16.mxu1 %v3433_v1 }
 0xecf   : > { %v1157_v30 = vpop.f32.mrf.mxu1 }
 0xed0   : > { %v1158_v31 = vadd.f32 %v3766_v4, %v1157_v30 }
 0xed1   : > { %v2654_v32 = vpop.f32.mrf.mxu1 }
 0xed2   : > { %1180 = vrot.lane.b32.xlu1 %v1158_v31, %s3436_s5  ;;  %v1164_v38 = vadd.f32 %v2530_v37, %v1158_v31 }
 0xed3   : > { %v1160_v33 = vpop.f32.mrf.mxu1 }
 0xed4   : > { %v1161_v34 = vadd.f32 %v3766_v4, %v1160_v33  ;;  %v2443_v40 = vmul.f32 -1.442695, %v1164_v38 }
 0xed5   : > { %v2655_v35 = vpop.f32.mrf.mxu1 }
 0xed6   : > { %1182 = vrot.lane.b32.xlu0 %v1161_v34, %s3436_s5  ;;  %v1165_v41 = vadd.f32 %v2531_v39, %v1161_v34  ;;  %2994 = vpow2.f32 %v2443_v40 }
 0xed8   : > { %v2444_v42 = vmul.f32 -1.442695, %v1165_v41 }
 0xeda   : > { %2996 = vpow2.f32 %v2444_v42 }
 0xee3   : > { %v2995_v43 = vpop.eup %2994 }
 0xee4   : > { %v1172_v44 = vadd.f32 1.0, %v2995_v43 }
 0xee6   : > { %2998 = vrcp.f32 %v1172_v44 }
 0xee7   : > { %v2997_v45 = vpop.eup %2996 }
 0xee8   : > { %v1173_v46 = vadd.f32 1.0, %v2997_v45 }
 0xeea   : > { %3000 = vrcp.f32 %v1173_v46 }
 0xef3   : > { %v2999_v47 = vpop.eup %2998 }
 0xef4   : > { %v1200_v60 = vsub.f32 1.0, %v2999_v47  ;;  %v1212_v3 = vmul.f32 %v2999_v47, %v1109_v26 }
 0xef7   : > { %v3001_v50 = vpop.eup %3000 }
 0xef8   : > { %v1201_v62 = vsub.f32 1.0, %v3001_v50  ;;  %v1213_v5 = vmul.f32 %v3001_v50, %v1110_v27 }
 0xf44   : > { %v1181_v48 = vpop.permute.xlu1 %1180 }
 0xf45   : > { %v1186_v49 = vmul.f32 %v2999_v47, %v1181_v48 }
 0xf47   : > { %1190 = vrot.lane.b32.xlu1 %v1186_v49, %s3436_s5 }
 0xf48   : > { %v1183_v51 = vpop.permute.xlu0 %1182 }
 0xf49   : > { %v1187_v52 = vmul.f32 %v3001_v50, %v1183_v51 }
 0xf4b   : > { %1192 = vrot.lane.b32.xlu0 %v1187_v52, %s3436_s5 }
 0xfb9   : > { %v1191_v53 = vpop.permute.xlu1 %1190 }
 0xfba   : > { %v1196_v54 = vadd.f32 %v2530_v37, %v1191_v53 }
 0xfbc   : > { %3002 = vtanh.f32 %v1196_v54 }
 0xfbd   : > { %v1193_v55 = vpop.permute.xlu0 %1192 }
 0xfbe   : > { %v1197_v56 = vadd.f32 %v2531_v39, %v1193_v55 }
 0xfc0   : > { %3004 = vtanh.f32 %v1197_v56 }
 0xfc9   : > { %v3003_v57 = vpop.eup %3002 }
 0xfca   : > { %1204 = vrot.lane.b32.xlu1 %v3003_v57, %s3437_s29 }
 0xfcd   : > { %v3005_v58 = vpop.eup %3004 }
 0xfce   : > { %1206 = vrot.lane.b32.xlu0 %v3005_v58, %s3437_s29 }
0x103c   : > { %v1205_v59 = vpop.permute.xlu1 %1204 }
0x103d   : > { %v1210_v61 = vmul.f32 %v1205_v59, %v1200_v60 }
0x103f   : > { %v1214_v7 = vadd.f32 %v1212_v3, %v1210_v61 }
0x1040   : > { %v1207_v63 = vpop.permute.xlu0 %1206 }
0x1041   : > { %v1211_v6 = vmul.f32 %v1207_v63, %v1201_v62 }
0x1043   : > { %v1215_v8 = vadd.f32 %v1213_v5, %v1211_v6 }
0x1045   : > { %v1221_v9 = vpack.c.bf16 %v1215_v8, %v1214_v7 }
0x1047   : > { %1223 = vrot.lane.b32.xlu1 %v1221_v9, %s3437_s29 }
0x10b9   : > { %v1224_v10 = vpop.permute.xlu1 %1223 }
0x10ba   : > { %2661 = vmatmul.mubr.msk.bf16.vlgmr.msra.gmra.mxu0 %vm594_vm1, %v1224_v10 }
0x10bb   : > { %2673 = vmatpush3.bf16.msra.mxu0 %v3738_v0  ;;  %2676 = vmatprep.mubr.msk.bf16.mxu0 %vm3434_vm0, %v3433_v1 }
0x10bc   : > { %2674 = vmatprep.subr.bf16.mxu0 %v3433_v1 }
0x10bf   : > { %2675 = vmatpush3.bf16.msra.mxu0 %v3747_v2 }
0x10c0   : > { %2688 = vmatprep.subr.bf16.mxu0 %v3433_v1 }
0x117a   : > { %v1262_v11 = vpop.f32.mrf.mxu0 }
0x117b   : > { %v1263_v12 = vadd.f32 %v3766_v4, %v1262_v11 }
0x117c   : > { %v2662_v13 = vpop.f32.mrf.mxu0 }
0x117d   : > { %1285 = vrot.lane.b32.xlu0 %v1263_v12, %s3436_s5  ;;  %v1269_v19 = vadd.f32 %v2534_v18, %v1263_v12 }
0x117e   : > { %v1265_v14 = vpop.f32.mrf.mxu0 }
0x117f   : > { %v1266_v15 = vadd.f32 %v3766_v4, %v1265_v14  ;;  %v2448_v21 = vmul.f32 -1.442695, %v1269_v19 }
0x1180   : > { %v2663_v16 = vpop.f32.mrf.mxu0 }
0x1181   : > { %1287 = vrot.lane.b32.xlu1 %v1266_v15, %s3436_s5  ;;  %v1270_v22 = vadd.f32 %v2535_v20, %v1266_v15  ;;  %3006 = vpow2.f32 %v2448_v21 }
0x1183   : > { %v2449_v23 = vmul.f32 -1.442695, %v1270_v22 }
0x1185   : > { %3008 = vpow2.f32 %v2449_v23 }
0x118e   : > { %v3007_v24 = vpop.eup %3006 }
0x118f   : > { %v1277_v25 = vadd.f32 1.0, %v3007_v24 }
0x1191   : > { %3010 = vrcp.f32 %v1277_v25 }
0x1192   : > { %v3009_v26 = vpop.eup %3008 }
0x1193   : > { %v1278_v27 = vadd.f32 1.0, %v3009_v26 }
0x1195   : > { %3012 = vrcp.f32 %v1278_v27 }
0x119e   : > { %v3011_v28 = vpop.eup %3010 }
0x119f   : > { %v1305_v41 = vsub.f32 1.0, %v3011_v28  ;;  %v1317_v45 = vmul.f32 %v3011_v28, %v1214_v7 }
0x11a2   : > { %v3013_v31 = vpop.eup %3012 }
0x11a3   : > { %v1306_v43 = vsub.f32 1.0, %v3013_v31  ;;  %v1318_v46 = vmul.f32 %v3013_v31, %v1215_v8 }
0x11ef   : > { %v1286_v29 = vpop.permute.xlu0 %1285 }
0x11f0   : > { %v1291_v30 = vmul.f32 %v3011_v28, %v1286_v29 }
0x11f2   : > { %1295 = vrot.lane.b32.xlu0 %v1291_v30, %s3436_s5 }
0x11f3   : > { %v1288_v32 = vpop.permute.xlu1 %1287 }
0x11f4   : > { %v1292_v33 = vmul.f32 %v3013_v31, %v1288_v32 }
0x11f6   : > { %1297 = vrot.lane.b32.xlu1 %v1292_v33, %s3436_s5 }
0x1264   : > { %v1296_v34 = vpop.permute.xlu0 %1295 }
0x1265   : > { %v1301_v35 = vadd.f32 %v2534_v18, %v1296_v34 }
0x1267   : > { %3014 = vtanh.f32 %v1301_v35 }
0x1268   : > { %v1298_v36 = vpop.permute.xlu1 %1297 }
0x1269   : > { %v1302_v37 = vadd.f32 %v2535_v20, %v1298_v36 }
0x126b   : > { %3016 = vtanh.f32 %v1302_v37  ;;  %v2555_v37 = vld [vmem:[%s4087_s1 + $0x40] sm:$0xff]  }
0x1274   : > { %v3015_v38 = vpop.eup %3014 }
0x1275   : > { %1309 = vrot.lane.b32.xlu0 %v3015_v38, %s3437_s29  ;;  %v2542_v38 = vunpack.c.l.bf16 %v2555_v37 }
0x1278   : > { %v3017_v39 = vpop.eup %3016 }
0x1279   : > { %1311 = vrot.lane.b32.xlu1 %v3017_v39, %s3437_s29 }
0x12e7   : > { %v1310_v40 = vpop.permute.xlu0 %1309 }
0x12e8   : > { %v1315_v42 = vmul.f32 %v1310_v40, %v1305_v41  ;;  %v2543_v40 = vunpack.c.h.bf16 %v2555_v37 }
0x12ea   : > { %v1319_v48 = vadd.f32 %v1317_v45, %v1315_v42 }
0x12eb   : > { %v1312_v44 = vpop.permute.xlu1 %1311 }
0x12ec   : > { %v1316_v47 = vmul.f32 %v1312_v44, %v1306_v43 }
0x12ee   : > { %v1320_v49 = vadd.f32 %v1318_v46, %v1316_v47 }
0x12f0   : > { %v1326_v50 = vpack.c.bf16 %v1320_v49, %v1319_v48 }
0x12f2   : > { %1328 = vrot.lane.b32.xlu0 %v1326_v50, %s3437_s29 }
0x1364   : > { %v1329_v51 = vpop.permute.xlu0 %1328 }
0x1365   : > { %2669 = vmatmul.mubr.msk.bf16.vlgmr.msra.gmra.mxu1 %vm594_vm1, %v1329_v51 }
0x1366   : > { %2681 = vmatpush3.bf16.msra.mxu1 %v3738_v0  ;;  %2684 = vmatprep.mubr.msk.bf16.mxu1 %vm3434_vm0, %v3433_v1  ;;  %v2554_v0 = vld [vmem:[%s4087_s1 + $0x38] sm:$0xff]  }
0x1367   : > { %2682 = vmatprep.subr.bf16.mxu1 %v3433_v1  ;;  %v2538_v58 = vunpack.c.l.bf16 %v2554_v0  ;;  %v2539_v59 = vunpack.c.h.bf16 %v2554_v0 }
0x136a   : > { %2683 = vmatpush3.bf16.msra.mxu1 %v3747_v2 }
0x136b   : > { %2696 = vmatprep.subr.bf16.mxu1 %v3433_v1 }
0x1425   : > { %v1367_v52 = vpop.f32.mrf.mxu1 }
0x1426   : > { %v1368_v53 = vadd.f32 %v3766_v4, %v1367_v52 }
0x1427   : > { %v2670_v54 = vpop.f32.mrf.mxu1 }
0x1428   : > { %1390 = vrot.lane.b32.xlu1 %v1368_v53, %s3436_s5  ;;  %v1374_v2 = vadd.f32 %v2538_v58, %v1368_v53 }
0x1429   : > { %v1370_v55 = vpop.f32.mrf.mxu1 }
0x142a   : > { %v1371_v56 = vadd.f32 %v3766_v4, %v1370_v55  ;;  %v2453_v60 = vmul.f32 -1.442695, %v1374_v2 }
0x142b   : > { %v2671_v57 = vpop.f32.mrf.mxu1 }
0x142c   : > { %1392 = vrot.lane.b32.xlu0 %v1371_v56, %s3436_s5  ;;  %v1375_v61 = vadd.f32 %v2539_v59, %v1371_v56  ;;  %3018 = vpow2.f32 %v2453_v60 }
0x142e   : > { %v2454_v62 = vmul.f32 -1.442695, %v1375_v61 }
0x1430   : > { %3020 = vpow2.f32 %v2454_v62 }
0x1439   : > { %v3019_v63 = vpop.eup %3018 }
0x143a   : > { %v1382_v3 = vadd.f32 1.0, %v3019_v63 }
0x143c   : > { %3022 = vrcp.f32 %v1382_v3 }
0x143d   : > { %v3021_v5 = vpop.eup %3020 }
0x143e   : > { %v1383_v6 = vadd.f32 1.0, %v3021_v5 }
0x1440   : > { %3024 = vrcp.f32 %v1383_v6 }
0x1449   : > { %v3023_v7 = vpop.eup %3022 }
0x144a   : > { %v1410_v20 = vsub.f32 1.0, %v3023_v7  ;;  %v1422_v24 = vmul.f32 %v3023_v7, %v1319_v48 }
0x144d   : > { %v3025_v10 = vpop.eup %3024 }
0x144e   : > { %v1411_v22 = vsub.f32 1.0, %v3025_v10  ;;  %v1423_v25 = vmul.f32 %v3025_v10, %v1320_v49 }
0x149a   : > { %v1391_v8 = vpop.permute.xlu1 %1390 }
0x149b   : > { %v1396_v9 = vmul.f32 %v3023_v7, %v1391_v8  ;;  %v3054_v8 = vld [vmem:[%s3734_s4] sm:$0xff] }
0x149d   : > { %1400 = vrot.lane.b32.xlu1 %v1396_v9, %s3436_s5 }
0x149e   : > { %v1393_v11 = vpop.permute.xlu0 %1392 }
0x149f   : > { %v1397_v12 = vmul.f32 %v3025_v10, %v1393_v11  ;;  %v3055_v10 = vld [vmem:[#allocation14] ss:$0 sm:$0xff] }
0x14a1   : > { %1402 = vrot.lane.b32.xlu0 %v1397_v12, %s3436_s5 }
0x150f   : > { %v1401_v13 = vpop.permute.xlu1 %1400 }
0x1510   : > { %v1406_v14 = vadd.f32 %v2538_v58, %v1401_v13 }
0x1512   : > { %3026 = vtanh.f32 %v1406_v14 }
0x1513   : > { %v1403_v15 = vpop.permute.xlu0 %1402 }
0x1514   : > { %v1407_v16 = vadd.f32 %v2539_v59, %v1403_v15 }
0x1516   : > { %3028 = vtanh.f32 %v1407_v16  ;;  %v2556_v16 = vld [vmem:[%s4087_s1 + $0x48] sm:$0xff]  }
0x151f   : > { %v3027_v17 = vpop.eup %3026 }
0x1520   : > { %1414 = vrot.lane.b32.xlu1 %v3027_v17, %s3437_s29  ;;  %v2546_v17 = vunpack.c.l.bf16 %v2556_v16 }
0x1523   : > { %v3029_v18 = vpop.eup %3028 }
0x1524   : > { %1416 = vrot.lane.b32.xlu0 %v3029_v18, %s3437_s29 }
0x1592   : > { %v1415_v19 = vpop.permute.xlu1 %1414 }
0x1593   : > { %v1420_v21 = vmul.f32 %v1415_v19, %v1410_v20  ;;  %v2547_v19 = vunpack.c.h.bf16 %v2556_v16 }
0x1595   : > { %v1424_v27 = vadd.f32 %v1422_v24, %v1420_v21 }
0x1596   : > { %v1417_v23 = vpop.permute.xlu0 %1416 }
0x1597   : > { %v1421_v26 = vmul.f32 %v1417_v23, %v1411_v22 }
0x1599   : > { %v1425_v28 = vadd.f32 %v1423_v25, %v1421_v26 }
0x159b   : > { %v1431_v29 = vpack.c.bf16 %v1425_v28, %v1424_v27 }
0x159d   : > { %1433 = vrot.lane.b32.xlu1 %v1431_v29, %s3437_s29 }
0x160f   : > { %v1434_v30 = vpop.permute.xlu1 %1433 }
0x1610   : > { %2677 = vmatmul.mubr.msk.bf16.vlgmr.msra.gmra.mxu0 %vm594_vm1, %v1434_v30 }
0x1611   : > { %2692 = vmatprep.mubr.msk.bf16.mxu0 %vm3434_vm0, %v3433_v1 }
0x16d0   : > { %v1472_v31 = vpop.f32.mrf.mxu0 }
0x16d1   : > { %v1473_v32 = vadd.f32 %v3766_v4, %v1472_v31 }
0x16d2   : > { %v2678_v33 = vpop.f32.mrf.mxu0 }
0x16d3   : > { %1495 = vrot.lane.b32.xlu0 %v1473_v32, %s3436_s5  ;;  %v1479_v39 = vadd.f32 %v2542_v38, %v1473_v32 }
0x16d4   : > { %v1475_v34 = vpop.f32.mrf.mxu0 }
0x16d5   : > { %v1476_v35 = vadd.f32 %v3766_v4, %v1475_v34  ;;  %v2458_v1 = vmul.f32 -1.442695, %v1479_v39  ;;  %v2931_v39 = vld [vmem:[#allocation20 + $0x8] sm:$0xff]  }
0x16d6   : > { %v2679_v36 = vpop.f32.mrf.mxu0 }
0x16d7   : > { %1497 = vrot.lane.b32.xlu1 %v1476_v35, %s3436_s5  ;;  %v1480_v41 = vadd.f32 %v2543_v40, %v1476_v35  ;;  %3030 = vpow2.f32 %v2458_v1  ;;  %v2932_v1 = vld [vmem:[#allocation16] sm:$0xff]  }
0x16d9   : > { %v2459_v42 = vmul.f32 -1.442695, %v1480_v41  ;;  %v2933_v41 = vld [vmem:[#allocation20] sm:$0xff]  }
0x16db   : > { %3032 = vpow2.f32 %v2459_v42 }
0x16e4   : > { %v3031_v43 = vpop.eup %3030 }
0x16e5   : > { %v1487_v44 = vadd.f32 1.0, %v3031_v43 }
0x16e7   : > { %3034 = vrcp.f32 %v1487_v44 }
0x16e8   : > { %v3033_v45 = vpop.eup %3032 }
0x16e9   : > { %v1488_v4 = vadd.f32 1.0, %v3033_v45 }
0x16eb   : > { %3036 = vrcp.f32 %v1488_v4 }
0x16f4   : > { %v3035_v46 = vpop.eup %3034 }
0x16f5   : > { %v1515_v58 = vsub.f32 1.0, %v3035_v46  ;;  %v1527_v61 = vmul.f32 %v3035_v46, %v1424_v27 }
0x16f8   : > { %v3037_v49 = vpop.eup %3036 }
0x16f9   : > { %v1516_v59 = vsub.f32 1.0, %v3037_v49  ;;  %v1528_v62 = vmul.f32 %v3037_v49, %v1425_v28 }
0x1745   : > { %v1496_v47 = vpop.permute.xlu0 %1495 }
0x1746   : > { %v1501_v48 = vmul.f32 %v3035_v46, %v1496_v47 }
0x1748   : > { %1505 = vrot.lane.b32.xlu0 %v1501_v48, %s3436_s5 }
0x1749   : > { %v1498_v50 = vpop.permute.xlu1 %1497 }
0x174a   : > { %v1502_v51 = vmul.f32 %v3037_v49, %v1498_v50 }
0x174c   : > { %1507 = vrot.lane.b32.xlu1 %v1502_v51, %s3436_s5 }
0x17ba   : > { %v1506_v52 = vpop.permute.xlu0 %1505 }
0x17bb   : > { %v1511_v53 = vadd.f32 %v2542_v38, %v1506_v52  ;;  %v2930_v38 = vld [vmem:[#allocation16 + $0x8] sm:$0xff]  }
0x17bc   : > { %2689 = vmatpush3.bf16.msra.mxu0 %v2930_v38 }
0x17bd   : > { %3038 = vtanh.f32 %v1511_v53  ;;  %2690 = vmatprep.subr.bf16.mxu0 %v3054_v8 }
0x17be   : > { %v1508_v54 = vpop.permute.xlu1 %1507 }
0x17bf   : > { %v1512_v55 = vadd.f32 %v2543_v40, %v1508_v54 }
0x17c0   : > { %2691 = vmatpush3.bf16.msra.mxu0 %v2932_v1 }
0x17c1   : > { %3040 = vtanh.f32 %v1512_v55  ;;  %v1785_v55 = vld [vmem:[%s3712_s26] sm:$0xff] }
0x17ca   : > { %v3039_v56 = vpop.eup %3038 }
0x17cb   : > { %1519 = vrot.lane.b32.xlu0 %v3039_v56, %s3437_s29  ;;  %v1786_v56 = vld [vmem:[%s3712_s26 + $0x8] sm:$0xff] }
0x17ce   : > { %v3041_v57 = vpop.eup %3040 }
0x17cf   : > { %1521 = vrot.lane.b32.xlu1 %v3041_v57, %s3437_s29  ;;  %v1787_v57 = vunpack.c.l.bf16 %v1785_v55 }
0x17d1   : > { %1791 = vst [vmem:[#allocation5 + $0x8] sm:$0xff] %v1787_v57 }
0x183d   : > { %v1520_v0 = vpop.permute.xlu0 %1519 }
0x183e   : > { %v1525_v2 = vmul.f32 %v1520_v0, %v1515_v58  ;;  %v1788_v0 = vunpack.c.h.bf16 %v1785_v55  ;;  %v1789_v58 = vunpack.c.l.bf16 %v1786_v56 }
0x1840   : > { %v1529_v3 = vadd.f32 %v1527_v61, %v1525_v2  ;;  %v1790_v2 = vunpack.c.h.bf16 %v1786_v56  ;;  %1792 = vst [vmem:[#allocation5] sm:$0xff] %v1788_v0  ;;  %1793 = vst [vmem:[#allocation5 + $0x10] sm:$0xff] %v1789_v58 }
0x1841   : > { %v1522_v60 = vpop.permute.xlu1 %1521 }
0x1842   : > { %v1526_v63 = vmul.f32 %v1522_v60, %v1516_v59  ;;  %1794 = vst [vmem:[#allocation5 + $0x18] sm:$0xff] %v1790_v2  ;;  %v2465_v59 = vld [vmem:[#allocation19] ss:$0 sm:$0xff]  ;;  %v2469_v60 = vld [vmem:[%s4099_s13] ss:$0 sm:$0xff] }
0x1844   : > { %v3927_v5 = vadd.f32 %v1528_v62, %v1526_v63 }
0x1846   : > { %v1536_v6 = vpack.c.bf16 %v3927_v5, %v1529_v3 }
0x1848   : > { %1538 = vrot.lane.b32.xlu0 %v1536_v6, %s3437_s29 }
0x18ba   : > { %v1539_v7 = vpop.permute.xlu0 %1538 }
0x18bb   : > { %2685 = vmatmul.mubr.msk.bf16.vlgmr.msra.gmra.mxu1 %vm594_vm1, %v1539_v7 }
0x18bc   : > { %2700 = vmatprep.mubr.msk.bf16.mxu1 %vm3434_vm0, %v3054_v8  ;;  %2697 = vmatpush3.bf16.msra.mxu1 %v2931_v39 }
0x18bd   : > { %2698 = vmatprep.subr.bf16.mxu1 %v3054_v8 }
0x18c0   : > { %2699 = vmatpush3.bf16.msra.mxu1 %v2933_v41 }
0x197b   : > { %v1577_v9 = vpop.f32.mrf.mxu1 }
0x197c   : > { %v1578_v11 = vadd.f32 %v3055_v10, %v1577_v9 }
0x197d   : > { %v2686_v12 = vpop.f32.mrf.mxu1 }
0x197e   : > { %1600 = vrot.lane.b32.xlu1 %v1578_v11, %s3436_s5  ;;  %v1584_v18 = vadd.f32 %v2546_v17, %v1578_v11 }
0x197f   : > { %v1580_v13 = vpop.f32.mrf.mxu1 }
0x1980   : > { %v1581_v14 = vadd.f32 %v3055_v10, %v1580_v13  ;;  %v2463_v20 = vmul.f32 -1.442695, %v1584_v18 }
0x1981   : > { %v2687_v15 = vpop.f32.mrf.mxu1 }
0x1982   : > { %1602 = vrot.lane.b32.xlu0 %v1581_v14, %s3436_s5  ;;  %v1585_v21 = vadd.f32 %v2547_v19, %v1581_v14  ;;  %3042 = vpow2.f32 %v2463_v20 }
0x1984   : > { %v2464_v22 = vmul.f32 -1.442695, %v1585_v21 }
0x1986   : > { %3044 = vpow2.f32 %v2464_v22 }
0x198f   : > { %v3043_v23 = vpop.eup %3042 }
0x1990   : > { %v1592_v24 = vadd.f32 1.0, %v3043_v23 }
0x1992   : > { %3046 = vrcp.f32 %v1592_v24 }
0x1993   : > { %v3045_v25 = vpop.eup %3044 }
0x1994   : > { %v1593_v26 = vadd.f32 1.0, %v3045_v25 }
0x1996   : > { %3048 = vrcp.f32 %v1593_v26 }
0x199f   : > { %v3047_v27 = vpop.eup %3046 }
0x19a0   : > { %v1620_v42 = vsub.f32 1.0, %v3047_v27  ;;  %v1632_v44 = vmul.f32 %v3047_v27, %v1529_v3 }
0x19a3   : > { %v3049_v30 = vpop.eup %3048 }
0x19a4   : > { %v1621_v46 = vsub.f32 1.0, %v3049_v30  ;;  %v1633_v48 = vmul.f32 %v3049_v30, %v3927_v5 }
0x19f0   : > { %v1601_v28 = vpop.permute.xlu1 %1600 }
0x19f1   : > { %v1606_v29 = vmul.f32 %v3047_v27, %v1601_v28 }
0x19f3   : > { %1610 = vrot.lane.b32.xlu1 %v1606_v29, %s3436_s5 }
0x19f4   : > { %v1603_v31 = vpop.permute.xlu0 %1602 }
0x19f5   : > { %v1607_v32 = vmul.f32 %v3049_v30, %v1603_v31 }
0x19f7   : > { %1612 = vrot.lane.b32.xlu0 %v1607_v32, %s3436_s5 }
0x1a65   : > { %v1611_v33 = vpop.permute.xlu1 %1610 }
0x1a66   : > { %v1616_v34 = vadd.f32 %v2546_v17, %v1611_v33 }
0x1a68   : > { %3050 = vtanh.f32 %v1616_v34 }
0x1a69   : > { %v1613_v35 = vpop.permute.xlu0 %1612 }
0x1a6a   : > { %v1617_v36 = vadd.f32 %v2547_v19, %v1613_v35 }
0x1a6c   : > { %3052 = vtanh.f32 %v1617_v36 }
0x1a75   : > { %v3051_v37 = vpop.eup %3050 }
0x1a76   : > { %1624 = vrot.lane.b32.xlu1 %v3051_v37, %s3437_s29 }
0x1a79   : > { %v3053_v40 = vpop.eup %3052 }
0x1a7a   : > { %1626 = vrot.lane.b32.xlu0 %v3053_v40, %s3437_s29 }
0x1ae8   : > { %v1625_v43 = vpop.permute.xlu1 %1624 }
0x1ae9   : > { %v1630_v45 = vmul.f32 %v1625_v43, %v1620_v42 }
0x1aeb   : > { %v1634_v4 = vadd.f32 %v1632_v44, %v1630_v45 }
0x1aec   : > { %v1627_v47 = vpop.permute.xlu0 %1626 }
0x1aed   : > { %v1631_v49 = vmul.f32 %v1627_v47, %v1621_v46  ;;  %1639 = vrot.lane.b32.xlu0 %v1634_v4, %s3437_s29 }
0x1aef   : > { %v1635_v50 = vadd.f32 %v1633_v48, %v1631_v49 }
0x1af1   : > { %v1636_v51 = vpack.c.bf16 %v1635_v50, %v1634_v4 }
0x1af3   : > { %1659 = vrot.lane.b32.xlu1 %v1636_v51, %s3437_s29 }
0x1af7   : > { %1641 = vrot.lane.b32.xlu1 %v1635_v50, %s3437_s29 }
0x1b5f   : > { %v1640_v52 = vpop.permute.xlu0 %1639 }
0x1b60   : > { %1645 = vst.msk [vmem:[#allocation2] sm:$0xff] %vm594_vm1, %v1640_v52 }
0x1b65   : > { %v1660_v53 = vpop.permute.xlu1 %1659 }
0x1b66   : > { %2693 = vmatmul.mubr.msk.bf16.vlgmr.msra.gmra.mxu0 %vm594_vm1, %v1660_v53  ;;  %2701 = vmatmul.mubr.msk.bf16.vlgmr.msra.gmra.mxu1 %vm594_vm1, %v1660_v53 }
0x1b69   : > { %v1642_v54 = vpop.permute.xlu1 %1641 }
0x1b6a   : > { %1646 = vst.msk [vmem:[#allocation2 + $0x8] sm:$0xff] %vm594_vm1, %v1642_v54 }
0x1c26   : > { %v1710_v61 = vpop.f32.mrf.mxu0  ;;  %v1776_v62 = vpop.f32.mrf.mxu1 }
0x1c27   : > { %v1711_v63 = vadd.f32 %v2465_v59, %v1710_v61  ;;  %v1777_v3 = vadd.f32 %v2469_v60, %v1776_v62 }
0x1c28   : > { %v2694_v5 = vpop.f32.mrf.mxu0  ;;  %v2702_v6 = vpop.f32.mrf.mxu1 }
0x1c29   : > { %1717 = vst [vmem:[#allocation3] sm:$0xff] %v1711_v63  ;;  %1783 = vst [vmem:[#allocation4 + $0x8] sm:$0xff] %v1777_v3 }
0x1c2a   : > { %v1713_v7 = vpop.f32.mrf.mxu0  ;;  %v1779_v8 = vpop.f32.mrf.mxu1 }
0x1c2b   : > { %v1714_v9 = vadd.f32 %v2465_v59, %v1713_v7  ;;  %v1780_v10 = vadd.f32 %v2469_v60, %v1779_v8 }
0x1c2c   : > { %v2695_v11 = vpop.f32.mrf.mxu0  ;;  %v2703_v12 = vpop.f32.mrf.mxu1 }
0x1c2d   : > { %1718 = vst [vmem:[#allocation3 + $0x8] sm:$0xff] %v1714_v9  ;;  %1784 = vst [vmem:[#allocation4] sm:$0xff] %v1780_v10 }
0x1c2e PF: > { %p2473_p1 = scmp.le.s32.totalorder %s3549_s21, 0 }
0x1c2f   : > { %s3440_s25 = smov (!%p2473_p1), 64   ;;  %s3441_s27 = smov (!%p2473_p1), 96  }
0x1c30   : > { %1800 = sbr.rel (%p2473_p1) target bundleno = 8663 (0x21d7), region = 112  ;;  %s3442_s23 = smov (!%p2473_p1), 32  }
0x1c31   : > { %s3981_s20 = sld [smem:[#allocation7 + %s3549_s21]] (!%p2473_p1) }
0x1c35   : > { %v3056_v13 = vld [vmem:[#allocation17 + $0x8] sm:$0xff]   ;;  %v3438_v14 = vmov 0.0   ;;  %v3057_v15 = vld [vmem:[#allocation17] sm:$0xff]   ;;  %vm3439_vm2 = vmmov 0   ;;  %v1802_v17 = vld [vmem:[#allocation2 + $0x8] sm:$0xff]  ;;  %vm1835_vm3 = vcmask 261120  }
0x1c36   : > { %2704 = vmatprep.subr.bf16.mxu0 %v3438_v14  ;;  %2712 = vmatprep.subr.bf16.mxu1 %v3438_v14  ;;  %v1801_v16 = vld [vmem:[#allocation2] sm:$0xff]  ;;  %v1803_v26 = vld [vmem:[#allocation5 + $0x8] sm:$0xff]  ;;  %v1807_v27 = vld [vmem:[#allocation3] sm:$0xff] }
0x1c37   : > { %2705 = vmatpush3.bf16.msra.mxu0 %v3056_v13  ;;  %2708 = vmatprep.mubr.msk.bf16.mxu0 %vm3439_vm2, %v3438_v14  ;;  %v1811_v18 = vpack.c.bf16 %v1802_v17, %v1801_v16  ;;  %v2474_v19 = vld [vmem:[%s4096_s10] ss:$0 sm:$0xff]  ;;  %v1809_v28 = vadd.f32 %v1807_v27, %v1803_v26  ;;  %v1808_v30 = vld [vmem:[#allocation3 + $0x8] sm:$0xff]  ;;  %v3058_v50 = vld [vmem:[%s4097_s11 + $0x8] sm:$0xff]   ;;  %p2023_p8 = scmp.gt.s32.totalorder %s3981_s20, 0 }
0x1c38   : > { %2706 = vmatprep.subr.bf16.mxu0 %v3438_v14  ;;  %2716 = vmatprep.mubr.msk.bf16.mxu1 %vm3439_vm2, %v3438_v14  ;;  %v1805_v29 = vld [vmem:[#allocation5 + $0x10] sm:$0xff]  ;;  %v2028_v7 = vld [vmem:[%s3712_s26 + $0x8] sm:$0xff]  ;;  %s4142_s22 = sld [smem:[#allocation30_spill]] (!%p2023_p8) }
0x1c39   : > { %v1810_v32 = vadd.f32 %v1808_v30, %v1805_v29  ;;  %2713 = vmatpush3.bf16.msra.mxu1 %v3058_v50  ;;  %v3059_v51 = vld [vmem:[%s4097_s11] sm:$0xff]   ;;  %s2771_s5 = scalar_select %p2023_p8, 1, 0  ;;  %v2031_v10 = vunpack.c.l.bf16 %v2028_v7  ;;  %v2032_v11 = vunpack.c.h.bf16 %v2028_v7 }
0x1c3a   : > { %2714 = vmatprep.subr.bf16.mxu1 %v3438_v14  ;;  %v2027_v6 = vld [vmem:[%s3712_s26] sm:$0xff] }
0x1c3b   : > { %2707 = vmatpush3.bf16.msra.mxu0 %v3057_v15  ;;  %v2029_v8 = vunpack.c.l.bf16 %v2027_v6  ;;  %v2030_v9 = vunpack.c.h.bf16 %v2027_v6  ;;  %v2772_v12 = vstv %s2771_s5 }
0x1c3c   : > { %vm2773_vm4 = vcmp.ne.s32.totalorder %v2772_v12, 0 }
0x1c3d   : > { %2715 = vmatpush3.bf16.msra.mxu1 %v3059_v51  ;;  %v2774_v13 = vsel %vm2773_vm4, %v2029_v8, 0   ;;  %v2778_v14 = vsel %vm2773_vm4, %v2030_v9, 0   ;;  %v2782_v15 = vsel %vm2773_vm4, %v2031_v10, 0  }
0x1c3e   : > { %2709 = vmatmul.mubr.msk.bf16.vlgmr.msra.gmra.mxu0 %vm1835_vm3, %v1811_v18 }
0x1cfe   : > { %v1873_v20 = vpop.f32.mrf.mxu0 }
0x1cff   : > { %v1874_v21 = vadd.f32 %v2474_v19, %v1873_v20 }
0x1d00   : > { %v2710_v22 = vpop.f32.mrf.mxu0 }
0x1d01   : > { %1896 = vrot.lane.b32.xlu0 %v1874_v21, %s3440_s25  ;;  %v1880_v31 = vadd.f32 %v1874_v21, %v1809_v28  ;;  %v1806_v22 = vld [vmem:[#allocation5 + $0x18] sm:$0xff] }
0x1d02   : > { %v1876_v23 = vpop.f32.mrf.mxu0 }
0x1d03   : > { %v1877_v24 = vadd.f32 %v2474_v19, %v1876_v23  ;;  %v2478_v33 = vmul.f32 -1.442695, %v1880_v31  ;;  %v2006_v19 = vld [vmem:[#allocation4 + $0x8] sm:$0xff] }
0x1d04   : > { %v2711_v25 = vpop.f32.mrf.mxu0 }
0x1d05   : > { %1898 = vrot.lane.b32.xlu0 %v1877_v24, %s3440_s25  ;;  %v1881_v34 = vadd.f32 %v1877_v24, %v1810_v32  ;;  %3060 = vpow2.f32 %v2478_v33  ;;  %v2007_v25 = vld [vmem:[#allocation4] sm:$0xff] }
0x1d07   : > { %v2479_v35 = vmul.f32 -1.442695, %v1881_v34 }
0x1d09   : > { %3062 = vpow2.f32 %v2479_v35 }
0x1d12   : > { %v3061_v36 = vpop.eup %3060 }
0x1d13   : > { %v1888_v37 = vadd.f32 1.0, %v3061_v36 }
0x1d15   : > { %3064 = vrcp.f32 %v1888_v37 }
0x1d16   : > { %v3063_v38 = vpop.eup %3062 }
0x1d17   : > { %v1889_v39 = vadd.f32 1.0, %v3063_v38 }
0x1d19   : > { %3066 = vrcp.f32 %v1889_v39 }
0x1d22   : > { %v3065_v40 = vpop.eup %3064 }
0x1d23   : > { %v1916_v53 = vsub.f32 1.0, %v3065_v40 }
0x1d26   : > { %v3067_v42 = vpop.eup %3066 }
0x1d27   : > { %v1917_v58 = vsub.f32 1.0, %v3067_v42 }
0x1d73   : > { %v1897_v1 = vpop.permute.xlu0 %1896 }
0x1d74   : > { %v1902_v41 = vmul.f32 %v3065_v40, %v1897_v1 }
0x1d76   : > { %1906 = vrot.lane.b32.xlu1 %v1902_v41, %s3440_s25 }
0x1d77   : > { %v1899_v43 = vpop.permute.xlu0 %1898 }
0x1d78   : > { %v1903_v44 = vmul.f32 %v3067_v42, %v1899_v43 }
0x1d7a   : > { %1908 = vrot.lane.b32.xlu1 %v1903_v44, %s3440_s25 }
0x1de8   : > { %v1907_v45 = vpop.permute.xlu1 %1906 }
0x1de9   : > { %v1912_v4 = vadd.f32 %v1907_v45, %v1809_v28 }
0x1deb   : > { %3068 = vtanh.f32 %v1912_v4 }
0x1dec   : > { %v1909_v46 = vpop.permute.xlu1 %1908 }
0x1ded   : > { %v1913_v47 = vadd.f32 %v1909_v46, %v1810_v32 }
0x1def   : > { %3070 = vtanh.f32 %v1913_v47 }
0x1df8   : > { %v3069_v48 = vpop.eup %3068 }
0x1df9   : > { %1920 = vrot.lane.b32.xlu0 %v3069_v48, %s3441_s27 }
0x1dfc   : > { %v3071_v49 = vpop.eup %3070 }
0x1dfd   : > { %1930 = vrot.lane.b32.xlu0 %v1801_v16, %s3442_s23  ;;  %1922 = vrot.lane.b32.xlu1 %v3071_v49, %s3441_s27  ;;  %v2786_v16 = vsel %vm2773_vm4, %v2032_v11, 0  }
0x1e01   : > { %1932 = vrot.lane.b32.xlu1 %v1802_v17, %s3442_s23  ;;  %v1804_v17 = vld [vmem:[#allocation5] sm:$0xff] }
0x1e6b   : > { %v1921_v52 = vpop.permute.xlu0 %1920 }
0x1e6c   : > { %v1926_v56 = vmul.f32 %v1921_v52, %v1916_v53 }
0x1e6f   : > { %v1931_v54 = vpop.permute.xlu0 %1930  ;;  %v1923_v55 = vpop.permute.xlu1 %1922 }
0x1e70   : > { %v1936_v57 = vmul.f32 %v3065_v40, %v1931_v54  ;;  %v1927_v59 = vmul.f32 %v1923_v55, %v1917_v58 }
0x1e72   : > { %v1938_v0 = vadd.f32 %v1936_v57, %v1926_v56 }
0x1e73   : > { %v1933_v2 = vpop.permute.xlu1 %1932 }
0x1e74   : > { %v1937_v60 = vmul.f32 %v3067_v42, %v1933_v2  ;;  %2014 = vrot.lane.b32.xlu1 %v1938_v0, %s3441_s27 }
0x1e76   : > { %v1939_v61 = vadd.f32 %v1937_v60, %v1927_v59 }
0x1e78   : > { %v1940_v62 = vpack.c.bf16 %v1939_v61, %v1938_v0 }
0x1e7a   : > { %1946 = vrot.lane.b32.xlu0 %v1940_v62, %s3441_s27 }
0x1e7e   : > { %2016 = vrot.lane.b32.xlu0 %v1939_v61, %s3441_s27 }
0x1ee6   : > { %v2015_v63 = vpop.permute.xlu1 %2014 }
0x1ee7   : > { %2020 = vst.msk [vmem:[#allocation2] sm:$0xff] %vm1835_vm3, %v2015_v63 }
0x1eec   : > { %v1947_v3 = vpop.permute.xlu0 %1946 }
0x1eed   : > { %2717 = vmatmul.mubr.msk.bf16.vlgmr.msra.gmra.mxu1 %vm1835_vm3, %v1947_v3 }
0x1ef0   : > { %v2017_v5 = vpop.permute.xlu0 %2016 }
0x1ef1   : > { %2021 = vst.msk [vmem:[#allocation2 + $0x8] sm:$0xff] %vm1835_vm3, %v2017_v5 }
0x1fad   : > { %v1997_v18 = vpop.f32.mrf.mxu1 }
0x1fae   : > { %v2004_v20 = vadd.f32 %v1997_v18, %v1804_v17 }
0x1faf   : > { %v2718_v21 = vpop.f32.mrf.mxu1 }
0x1fb0   : > { %v2008_v23 = vadd.f32 %v2006_v19, %v2004_v20 }
0x1fb1   : > { %v2000_v24 = vpop.f32.mrf.mxu1 }
0x1fb2   : > { %2010 = vst [vmem:[%s3734_s4] sm:$0xff] %v2008_v23  ;;  %v2005_v26 = vadd.f32 %v2000_v24, %v1806_v22  ;;  %2039 = sbr.rel (%p2023_p8) target bundleno = 8661 (0x21d5), region = 120 }
0x1fb3   : > { %v2719_v27 = vpop.f32.mrf.mxu1 }
0x1fb4   : > { %v2009_v28 = vadd.f32 %v2007_v25, %v2005_v26 }
0x1fb6   : > { %2011 = vst [vmem:[%s3734_s4 + $0x8] sm:$0xff] %v2009_v28 }
0x1fb7   : > { %2040 = vmax.index.xlane.f32.xlu0 %v2008_v23  ;;  %v3072_v29 = vld [vmem:[%s4142_s22 + $0x38] sm:$0xff]   ;;  %v3443_v30 = vmov 0.0   ;;  %v3073_v31 = vld [vmem:[%s4142_s22 + $0x30] sm:$0xff]   ;;  %v3074_v32 = vld [vmem:[%s4142_s22 + $0x28] sm:$0xff]   ;;  %vm3444_vm5 = vmmov 0   ;;  %v2044_v39 = vlaneseq  ;;  %v3446_v4 = vmov 0  }
0x1fb8   : > { %2720 = vmatprep.subr.bf16.mxu0 %v3443_v30  ;;  %v3075_v33 = vld [vmem:[%s4142_s22 + $0x20] sm:$0xff]   ;;  %v3076_v34 = vld [vmem:[%s4142_s22 + $0x18] sm:$0xff]   ;;  %2736 = vmatprep.mubr.msk.bf16.mxu0 %vm3444_vm5, %v3443_v30  ;;  %v3077_v36 = vld [vmem:[%s4142_s22 + $0x10] sm:$0xff]   ;;  %v3445_v42 = vmov 1.0|1.0  }
0x1fb9   : > { %2721 = vmatpush3.bf16.msra.mxu0 %v3072_v29  ;;  %v3080_v35 = vld [vmem:[#allocation11 + $0x14] ss:$8 sps:$4 sm:$0xff]   ;;  %v2045_v1 = vand.u32 127, %v2044_v39  ;;  %v3082_v43 = vld [vmem:[#allocation11 + $0x10] ss:$8 sps:$4 sm:$0xff]   ;;  %2218 = vmatprep.mubr.bf16.mxu1 %v3446_v4 }
0x1fba   : > { %2722 = vmatprep.subr.bf16.mxu0 %v3443_v30  ;;  %2198 = vmatprep.subr.bf16.mxu1 %v3080_v35  ;;  %v3078_v37 = vld [vmem:[%s4142_s22 + $0x8] sm:$0xff]   ;;  %v3079_v38 = vld [vmem:[%s4142_s22] sm:$0xff]   ;;  %v3083_v44 = vld [vmem:[#allocation11 + $0x4] ss:$8 sps:$4 sm:$0xff]  }
0x1fbb   : > { %2042 = vmax.index.xlane.f32.xlu0 %v2009_v28  ;;  %2199 = vmatpush1.bf16.msra.mxu1 %v3082_v43  ;;  %v3085_v45 = vld [vmem:[#allocation11] ss:$8 sps:$4 sm:$0xff]  }
0x1fbc   : > { %2200 = vmatprep.subr.bf16.mxu1 %v3083_v44 }
0x1fbd   : > { %2723 = vmatpush3.bf16.msra.mxu0 %v3073_v31 }
0x1fbe   : > { %2724 = vmatprep.subr.bf16.mxu0 %v3443_v30 }
0x1fbf   : > { %2201 = vmatpush1.bf16.msra.mxu1 %v3085_v45 }
0x1fc1   : > { %2725 = vmatpush3.bf16.msra.mxu0 %v3074_v32 }
0x1fc2   : > { %2726 = vmatprep.subr.bf16.mxu0 %v3443_v30 }
0x1fc5   : > { %2727 = vmatpush3.bf16.msra.mxu0 %v3075_v33 }
0x1fc6   : > { %2728 = vmatprep.subr.bf16.mxu0 %v3443_v30 }
0x1fc9   : > { %2729 = vmatpush3.bf16.msra.mxu0 %v3076_v34 }
0x1fca   : > { %2730 = vmatprep.subr.bf16.mxu0 %v3443_v30 }
0x1fcd   : > { %2731 = vmatpush3.bf16.msra.mxu0 %v3077_v36 }
0x1fce   : > { %2732 = vmatprep.subr.bf16.mxu0 %v3443_v30 }
0x1fd1   : > { %2733 = vmatpush3.bf16.msra.mxu0 %v3078_v37 }
0x1fd2   : > { %2734 = vmatprep.subr.bf16.mxu0 %v3443_v30 }
0x1fd5   : > { %2735 = vmatpush3.bf16.msra.mxu0 %v3079_v38 }
0x2040   : > { %v2041_v40 = vpop.xlane.xlu0 %2040 }
0x2041   : > { %vm2046_vm6 = vcmp.eq.s32.totalorder %v2045_v1, %v2041_v40 }
0x2044   : > { %v2043_v41 = vpop.xlane.xlu0 %2042 }
0x2045   : > { %vm2047_vm7 = vcmp.eq.s32.totalorder %v2045_v1, %v2043_v41 }
0x2046   : > { %vm2494_vm8 = vmpackc.low %vm2047_vm7, %vm2046_vm6 }
0x2047   : > { %2737 = vmatmul.mubr.msk.bf16.vlgmr.msra.gmra.mxu0 %vm2494_vm8, %v3445_v42 }
0x2107   : > { %v2151_v46 = vpop.f32.mrf.mxu0 }
0x2109   : > { %v2738_v47 = vpop.f32.mrf.mxu0 }
0x210b   : > { %v2154_v48 = vpop.f32.mrf.mxu0 }
0x210c   : > { %v2158_v49 = vpack.c.bf16 %v2154_v48, %v2151_v46 }
0x210d   : > { %v2739_v50 = vpop.f32.mrf.mxu0 }
0x210e   : > { %2500 = vmatmul.mubr.msk.bf16.vlgmr.msra.gmra.mxu1 %vm1835_vm3, %v2158_v49 }
0x21ce   : > { %v2220_v13 = vpop.f32.mrf.mxu1  }
0x21d0   : > { %v2222_v14 = vpop.f32.mrf.mxu1  }
0x21d2   : > { %v2224_v15 = vpop.f32.mrf.mxu1  }
0x21d4   : > { %v2226_v16 = vpop.f32.mrf.mxu1  }
0x21d5 PF: > { %2233 = vst [vmem:[#allocation5 + $0x8] sm:$0xff] %v3418_v13  ;;  %2234 = vst [vmem:[#allocation5] sm:$0xff] %v3414_v14  ;;  %v3418_v13 = vphi %v2774_v13, %v2220_v13   ;;  %v3414_v14 = vphi %v2778_v14, %v2222_v14   ;;  %v3410_v15 = vphi %v2782_v15, %v2224_v15   ;;  %v3406_v16 = vphi %v2786_v16, %v2226_v16  }
0x21d6   : > { %2235 = vst [vmem:[#allocation5 + $0x10] sm:$0xff] %v3410_v15  ;;  %2236 = vst [vmem:[#allocation5 + $0x18] sm:$0xff] %v3406_v16 }
0x21d7 PF: > { %s2507_s27 = sshll.u32 %s3549_s21, 8  ;;  %s4143_s6 = sld [smem:[#allocation36_spill]] }
0x21d8   : > { %s2251_s8 = sshll.u32 %s3734_s4, 4  ;;  %s2238_s20 = scalar_lea.sflag [#allocation10], %s3708_s7  ;;  %s4044_s8 = int_to_ptr.vmem [resolvable:$true] %s2251_s8 }
0x21d9   : > { %s3304_s5 = scalar_lea.vmem %s4044_s8, 256  ;;  %p4144_p7 = scmp.ne.s32.totalorder %s4126_s0, 0 }
0x21da   : > { %p3305_p9 = scmp.ne.s32.totalorder %s4044_s8, %s3304_s5  ;;  %s3447_s26 = smov [#allocation22]  }
0x21db   : > { %s3308_s29 = sshll.u32 %s3447_s26, 4  ;;  %s3309_s29 = int_to_ptr.vmem [resolvable:$false] %s3308_s29 }
0x21dc   : > { %p3306_p2 = pnand %p3305_p9, %p4144_p7  ;;  %s3310_s21 = scalar_lea.vmem %s3309_s29, 512 }
0x21dd   : > { %s4041_s15 = scalar_lea.hbm %s4143_s6, %s2507_s27  ;;  %p3311_p3 = scmp.lt.s32.totalorder %s4044_s8, %s3309_s29 }
0x21de   : > { %p3307_p6 = pneg %p3306_p2  ;;  %p3312_p4 = scmp.lt.s32.totalorder %s3310_s21, %s3304_s5 }
0x21e0   : > { %p3313_p10 = por %p3312_p4, %p3311_p3 }
0x21e2   : > { %p3314_p11 = pnand %p3313_p10, %p3307_p6 }
0x21e4   : > { %3317 = shalt.err (!%p3314_p11)
}
0x21e5   : > { %s3318_s4 = scalar_lea.hbm %s4041_s15, 256  ;;  %s3322_s27 = scalar_lea.hbm %s4143_s6, 2048 }
0x21e6   : > { %p3319_p12 = scmp.ne.s32.totalorder %s4041_s15, %s3318_s4  ;;  %p3323_p5 = scmp.lt.s32.totalorder %s4041_s15, %s4143_s6 }
0x21e7   : > { %p3324_p1 = scmp.lt.s32.totalorder %s3322_s27, %s3318_s4 }
0x21e8   : > { %p3320_p13 = pnand %p3319_p12, %p4144_p7 }
0x21e9   : > { %p3325_p8 = por %p3324_p1, %p3323_p5 }
0x21ea   : > { %p3321_p0 = pneg %p3320_p13 }
0x21ec   : > { %p3326_p9 = pnand %p3325_p8, %p3321_p0 }
0x21ee   : > { %3329 = shalt.err (!%p3326_p9)
}
0x21ef   : > { %s3448_s5 = smov 128   ;;  %s3449_s26 = smov 8  }
0x21f0   : > { %2787 = dma.vmem_to_hbm [thread:$0]  (%p4144_p7), %s4044_s8, 256, %s4041_s15, %s2238_s20, %s3448_s5, %s3448_s5, %s3449_s26  }
0x21f1 PF: > { %p2835_p2 = scmp.ge.s32.totalorder %s3402_s19, 2  ;;  %s2266_s29 = sand.u32 1, %s3390_s16  }
0x21f2   : > { %p4145_p6 = scmp.ne.s32.totalorder %s4127_s3, 0  ;;  %s2267_s21 = scalar_lea.sflag [#allocation10], %s2266_s29 }
0x21f4   : > { %p2816_p3 = pnand %p2835_p2, %p4145_p6 }
0x21f6   : > { %p2817_p4 = pneg %p2816_p3 }
0x21f8   : > { %3385 = dma.done.wait (%p2817_p4), %s2267_s21, 256  }
0x21f9   : > { %3387 = vsyncadd (%p2817_p4), %s2267_s21, 4294967040  ;;  %p35_p10 = scmp.ge.s32.totalorder %s3639_s28, 10   ;;  %s4146_s16 = smov %s3394_s17 }
0x21fa   : > { %s4147_s17 = smov %s3398_s18  ;;  %s4148_s18 = smov %s3651_s14 }
0x21fb   : > { %s4149_s19 = smov %s3639_s28  ;;  %37 = sbr.rel (!%p35_p10) target bundleno = 21 (0x15), region = 170 }
0x2200   :  { %2272 = vsyncpa [#allocation9], 1 }
0x2201   :  { %2274 = vsyncpa [#allocation9 + $0x1], 1 }
0x2202   :  { %2275 = vsyncpa [#allocation12], 1 }
0x2203   :  { %2276 = vsyncpa [#allocation15], 1 }
0x2204   :  { %2277 = vsyncpa [#allocation18], 1 }
0x2205   :  { %2278 = vsyncpa [#allocation21], 1 }
0x2206   :  { %2279 = vsyncpa [#allocation10], 1 }
0x2207   :  { %2281 = vsyncpa [#allocation10 + $0x1], 1 }

</bundles_post_ra>
